<compile_context>
chip_gen: v7x
topology: tpu7x:2x2x1
jax: 0.10.0
libtpu: 0.0.40
codegen_flags: <defaults>
</compile_context>

<pallas_src>
import jax
import jax.numpy as jnp
from jax.experimental import pallas as pl
from jax.experimental.pallas import tpu as pltpu


def _lstm_kernel(x_ref, wih_ref, whh_ref, b_ref, wlin_ref, blin_ref,
                 h0_ref, c0_ref,
                 pred_ref, h_out_ref, c_out_ref,
                 xproj_ref):
    T = x_ref.shape[0]
    Hp = whh_ref.shape[0]          # padded per-gate width (multiple of 128)

    # Hoisted input projection + bias: one (T, 4Hp) VPU op before the loop.
    # (i|f|o columns of wih/b were pre-scaled by 0.5 at pack time.)
    xproj_ref[...] = x_ref[...] * wih_ref[...] + b_ref[...]

    def step(t, carry):
        h, c = carry
        # Recurrent matvec: whh stays a VMEM ref (no hoisted 128/256 KiB value);
        # cast the 1-row LHS to the MXU dtype, accumulate in f32.
        gates = xproj_ref[pl.ds(t, 1), :] + jnp.dot(
            h.astype(whh_ref.dtype), whh_ref[...],
            preferred_element_type=jnp.float32)            # (1, 4Hp) f32

        # Single EUP launch over all four gates; sigmoid(x) = 0.5*tanh(x/2)+0.5
        # (the /2 is already folded into the i|f|o weight columns).
        y = jnp.tanh(gates)
        sig = y[:, 0:3 * Hp] * 0.5 + 0.5                   # i | f | o
        i = sig[:, 0:Hp]
        f = sig[:, Hp:2 * Hp]
        o = sig[:, 2 * Hp:3 * Hp]
        g = y[:, 3 * Hp:4 * Hp]

        c_new = f * c + i * g
        h_new = o * jnp.tanh(c_new)
        return (h_new, c_new)

    # Fully unrolled short recurrence: lets the scheduler overlap step-t
    # bookkeeping with the MXU/EUP tail of step t-1.
    h, c = jax.lax.fori_loop(0, T, step, (h0_ref[...], c0_ref[...]),
                             unroll=True)

    h_out_ref[...] = h
    c_out_ref[...] = c
    # Final linear layer (output_size == 1): lane reduction + SMEM scalar bias.
    pred_ref[...] = (jnp.sum(h * wlin_ref[...], axis=1, keepdims=True)
                     + blin_ref[0])


def _pack_gate_cols(mat_t, H, Hp):
    """mat_t: (K, 4H) with PyTorch gate column order [i, f, g, o].
    Returns (K, 4Hp) with kernel order [i, f, o, g], each gate zero-padded to
    Hp.  The sigmoid gates (i, f, o) are pre-scaled by 0.5 so the kernel can
    use a single tanh for all gates (sigmoid(x) = 0.5*tanh(x/2) + 0.5)."""
    i = mat_t[:, 0:H]
    f = mat_t[:, H:2 * H]
    g = mat_t[:, 2 * H:3 * H]
    o = mat_t[:, 3 * H:4 * H]
    pad = lambda a: jnp.pad(a, ((0, 0), (0, Hp - H)))
    return jnp.concatenate([pad(0.5 * i), pad(0.5 * f), pad(0.5 * o), pad(g)],
                           axis=1)


def prepare_lstm_weights(w_ih, w_hh, b_ih, b_hh, w_lin, b_lin,
                         mxu_dtype=jnp.bfloat16):
    """One-time weight packing (hoisted out of the per-call path)."""
    H = int(w_hh.shape[1])
    Hp = ((H + 127) // 128) * 128            # lane-aligned per-gate width

    wih_p = _pack_gate_cols(jnp.transpose(w_ih).astype(jnp.float32), H, Hp)   # (1, 4Hp)
    whh_p = _pack_gate_cols(jnp.transpose(w_hh).astype(jnp.float32), H, Hp)   # (H, 4Hp)
    whh_p = jnp.pad(whh_p, ((0, Hp - H), (0, 0))).astype(mxu_dtype)           # (Hp, 4Hp)
    b_p = _pack_gate_cols((b_ih + b_hh).reshape(1, 4 * H).astype(jnp.float32), H, Hp)
    wlin_p = jnp.pad(w_lin.reshape(1, H).astype(jnp.float32),
                     ((0, 0), (0, Hp - H)))                                    # (1, Hp)
    blin = b_lin.reshape(1).astype(jnp.float32)                                # (1,) SMEM

    return {"params": (wih_p, whh_p, b_p, wlin_p, blin), "H": H, "Hp": Hp}


@jax.jit
def _lstm_forward_jit(params, input_seq, h0, c0):
    wih_p, whh_p, b_p, wlin_p, blin = params
    Hp = whh_p.shape[0]
    H = h0.shape[1]
    T = input_seq.shape[0]

    x = input_seq.reshape(T, 1).astype(jnp.float32)
    h0_p = jnp.pad(h0, ((0, 0), (0, Hp - H)))
    c0_p = jnp.pad(c0, ((0, 0), (0, Hp - H)))

    vmem = pl.BlockSpec(memory_space=pltpu.MemorySpace.VMEM)
    smem = pl.BlockSpec(memory_space=pltpu.MemorySpace.SMEM)

    pred, h_p, c_p = pl.pallas_call(
        _lstm_kernel,
        out_shape=(jax.ShapeDtypeStruct((1, 1), jnp.float32),
                   jax.ShapeDtypeStruct((1, Hp), jnp.float32),
                   jax.ShapeDtypeStruct((1, Hp), jnp.float32)),
        in_specs=[vmem] * 5 + [smem] + [vmem] * 2,
        out_specs=(vmem, vmem, vmem),
        scratch_shapes=[pltpu.VMEM((T, 4 * Hp), jnp.float32)],
    )(x, wih_p, whh_p, b_p, wlin_p, blin, h0_p, c0_p)

    return pred.reshape(-1), (h_p[:, :H], c_p[:, :H])


def lstm_forward(packed, input_seq, hidden_cell=None):
    """Reproduces LSTM.forward(input_seq).

    Returns (pred, (h, c)); pass the returned (h, c) back as `hidden_cell`
    to reproduce the module's stateful self.hidden_cell across calls.
    """
    H = packed["H"]
    if hidden_cell is None:
        h0 = jnp.zeros((1, H), jnp.float32)
        c0 = jnp.zeros((1, H), jnp.float32)
    else:
        h0, c0 = hidden_cell
        h0 = h0.reshape(1, H).astype(jnp.float32)
        c0 = c0.reshape(1, H).astype(jnp.float32)
    return _lstm_forward_jit(packed["params"], input_seq, h0, c0)


def lstm_reference(input_seq, w_ih, w_hh, b_ih, b_hh, w_lin, b_lin,
                   hidden_cell=None):
    """Pure-JAX reference matching torch.nn.LSTM semantics."""
    T = int(input_seq.shape[0])
    H = int(w_hh.shape[1])
    x = input_seq.reshape(T, 1).astype(jnp.float32)
    if hidden_cell is None:
        h = jnp.zeros((1, H), jnp.float32)
        c = jnp.zeros((1, H), jnp.float32)
    else:
        h, c = hidden_cell
    for t in range(T):
        gates = x[t:t + 1] @ w_ih.T + h @ w_hh.T + b_ih + b_hh
        i = jax.nn.sigmoid(gates[:, 0:H])
        f = jax.nn.sigmoid(gates[:, H:2 * H])
        g = jnp.tanh(gates[:, 2 * H:3 * H])
        o = jax.nn.sigmoid(gates[:, 3 * H:4 * H])
        c = f * c + i * g
        h = o * jnp.tanh(c)
    pred = (h @ w_lin.T + b_lin).reshape(-1)
    return pred, (h, c)


if __name__ == "__main__":
    # Shapes consistent with the module: input_size=1, hidden_layer_size=100,
    # output_size=1.  H=100 deliberately exercises the 128-lane gate padding.
    T = 8
    H = 100
    I, O = 1, 1

    key = jax.random.PRNGKey(0)
    kx1, kx2, k1, k2, k3, k4, k5, k6 = jax.random.split(key, 8)
    klstm = 1.0 / jnp.sqrt(jnp.float32(H))

    w_ih = jax.random.uniform(k1, (4 * H, I), jnp.float32, -klstm, klstm)
    w_hh = jax.random.uniform(k2, (4 * H, H), jnp.float32, -klstm, klstm)
    b_ih = jax.random.uniform(k3, (4 * H,), jnp.float32, -klstm, klstm)
    b_hh = jax.random.uniform(k4, (4 * H,), jnp.float32, -klstm, klstm)
    w_lin = jax.random.uniform(k5, (O, H), jnp.float32, -klstm, klstm)
    b_lin = jax.random.uniform(k6, (O,), jnp.float32, -klstm, klstm)

    seq1 = jax.random.normal(kx1, (T,), jnp.float32)
    seq2 = jax.random.normal(kx2, (T,), jnp.float32)

    ref1, ref_state1 = lstm_reference(seq1, w_ih, w_hh, b_ih, b_hh, w_lin, b_lin)
    ref2, _ = lstm_reference(seq2, w_ih, w_hh, b_ih, b_hh, w_lin, b_lin,
                             hidden_cell=ref_state1)

    # --- f32 MXU path: exact-semantics check (tight tolerance). -------------
    packed_f32 = prepare_lstm_weights(w_ih, w_hh, b_ih, b_hh, w_lin, b_lin,
                                      mxu_dtype=jnp.float32)
    pred1, state1 = lstm_forward(packed_f32, seq1)
    jax.block_until_ready(pred1)
    assert pred1.shape == (O,), pred1.shape
    assert jnp.allclose(pred1, ref1, atol=1e-4, rtol=1e-4), (pred1, ref1)
    assert jnp.allclose(state1[0], ref_state1[0], atol=1e-4, rtol=1e-4)
    assert jnp.allclose(state1[1], ref_state1[1], atol=1e-4, rtol=1e-4)

    # Call 2: carry hidden_cell across calls (stateful module semantics) and
    # verify the zero-padded lanes did not leak into the carried state.
    pred2, _ = lstm_forward(packed_f32, seq2, hidden_cell=state1)
    jax.block_until_ready(pred2)
    assert jnp.allclose(pred2, ref2, atol=1e-4, rtol=1e-4), (pred2, ref2)

    # --- bf16 MXU path (default, single-pass matmul): relaxed tolerance. ----
    packed_bf16 = prepare_lstm_weights(w_ih, w_hh, b_ih, b_hh, w_lin, b_lin,
                                       mxu_dtype=jnp.bfloat16)
    pred1b, state1b = lstm_forward(packed_bf16, seq1)
    jax.block_until_ready(pred1b)
    assert jnp.allclose(pred1b, ref1, atol=2e-2, rtol=2e-2), (pred1b, ref1)
    assert jnp.allclose(state1b[0], ref_state1[0], atol=2e-2, rtol=2e-2)
    assert jnp.allclose(state1b[1], ref_state1[1], atol=2e-2, rtol=2e-2)
    pred2b, _ = lstm_forward(packed_bf16, seq2, hidden_cell=state1b)
    jax.block_until_ready(pred2b)
    assert jnp.allclose(pred2b, ref2, atol=2e-2, rtol=2e-2), (pred2b, ref2)

    # TODO(synk): batching multiple independent sequences (B >= 8 sublanes,
    # core-parallel grid axis on v7x) is the next-order win, but the reference
    # module's forward processes a single sequence.
    print("KERNEL_OK")
</pallas_src>

<mosaic_0001>
module attributes {stable_mosaic.version = 11 : i64} {
  func.func @_lstm_kernel(%arg0: memref<8x1xf32, #tpu.memory_space<vmem>>, %arg1: memref<1x512xf32, #tpu.memory_space<vmem>>, %arg2: memref<128x512xf32, #tpu.memory_space<vmem>>, %arg3: memref<1x512xf32, #tpu.memory_space<vmem>>, %arg4: memref<1x128xf32, #tpu.memory_space<vmem>>, %arg5: memref<1xf32, #tpu.memory_space<smem>>, %arg6: memref<1x128xf32, #tpu.memory_space<vmem>>, %arg7: memref<1x128xf32, #tpu.memory_space<vmem>>, %arg8: memref<1x1xf32, #tpu.memory_space<vmem>>, %arg9: memref<1x128xf32, #tpu.memory_space<vmem>>, %arg10: memref<1x128xf32, #tpu.memory_space<vmem>>, %arg11: memref<8x512xf32, #tpu.memory_space<vmem>>) attributes {dimension_semantics = [], scalar_prefetch = 0 : i64, scratch_operands = 1 : i64, tpu.core_type = #tpu.core_type<tc>} {
    %c0 = arith.constant 0 : index
    %c0_0 = arith.constant 0 : index
    %0 = vector.load %arg0[%c0, %c0_0] : memref<8x1xf32, #tpu.memory_space<vmem>>, vector<8x1xf32>
    %c0_1 = arith.constant 0 : index
    %c0_2 = arith.constant 0 : index
    %1 = vector.load %arg1[%c0_1, %c0_2] : memref<1x512xf32, #tpu.memory_space<vmem>>, vector<1x512xf32>
    %2 = vector.broadcast %0 : vector<8x1xf32> to vector<8x512xf32>
    %3 = vector.broadcast %1 : vector<1x512xf32> to vector<8x512xf32>
    %4 = arith.mulf %2, %3 : vector<8x512xf32>
    %c0_3 = arith.constant 0 : index
    %c0_4 = arith.constant 0 : index
    %5 = vector.load %arg3[%c0_3, %c0_4] : memref<1x512xf32, #tpu.memory_space<vmem>>, vector<1x512xf32>
    %6 = vector.broadcast %5 : vector<1x512xf32> to vector<8x512xf32>
    %7 = arith.addf %4, %6 : vector<8x512xf32>
    %c0_5 = arith.constant 0 : index
    %c0_6 = arith.constant 0 : index
    %8 = vector.load %arg11[%c0_5, %c0_6] : memref<8x512xf32, #tpu.memory_space<vmem>>, vector<8x512xf32>
    tpu.vector_store %arg11[%c0_5, %c0_6], %7 {strides = array<i32>} : memref<8x512xf32, #tpu.memory_space<vmem>>, vector<8x512xf32>,
    %c0_7 = arith.constant 0 : index
    %c0_8 = arith.constant 0 : index
    %9 = vector.load %arg6[%c0_7, %c0_8] : memref<1x128xf32, #tpu.memory_space<vmem>>, vector<1x128xf32>
    %c0_9 = arith.constant 0 : index
    %c0_10 = arith.constant 0 : index
    %10 = vector.load %arg7[%c0_9, %c0_10] : memref<1x128xf32, #tpu.memory_space<vmem>>, vector<1x128xf32>
    %c0_i32 = arith.constant 0 : i32
    %11 = arith.index_cast %c0_i32 : i32 to index
    %c0_11 = arith.constant 0 : index
    %12 = vector.load %arg11[%11, %c0_11] : memref<8x512xf32, #tpu.memory_space<vmem>>, vector<1x512xf32>
    %c0_12 = arith.constant 0 : index
    %c0_13 = arith.constant 0 : index
    %13 = vector.load %arg2[%c0_12, %c0_13] : memref<128x512xf32, #tpu.memory_space<vmem>>, vector<128x512xf32>
    %cst = arith.constant dense<0.000000e+00> : vector<1x512xf32>
    %14 = tpu.matmul %9, %13, %cst {dimension_numbers = #tpu.dot_dimension_numbers<[1], [0], [0], [1], [0, 0, 1, 1], [], []>} : vector<1x128xf32>, vector<128x512xf32>, vector<1x512xf32> -> vector<1x512xf32>
    %15 = arith.addf %12, %14 : vector<1x512xf32>
    %16 = math.tanh %15 : vector<1x512xf32>
    %17 = vector.extract_strided_slice %16 {offsets = [0, 0], sizes = [1, 384], strides = [1, 1]} : vector<1x512xf32> to vector<1x384xf32>
    %cst_14 = arith.constant 5.000000e-01 : f32
    %18 = vector.broadcast %cst_14 : f32 to vector<1x384xf32>
    %19 = arith.mulf %17, %18 : vector<1x384xf32>
    %cst_15 = arith.constant 5.000000e-01 : f32
    %20 = vector.broadcast %cst_15 : f32 to vector<1x384xf32>
    %21 = arith.addf %19, %20 : vector<1x384xf32>
    %22 = vector.extract_strided_slice %21 {offsets = [0, 0], sizes = [1, 128], strides = [1, 1]} : vector<1x384xf32> to vector<1x128xf32>
    %23 = vector.extract_strided_slice %21 {offsets = [0, 128], sizes = [1, 128], strides = [1, 1]} : vector<1x384xf32> to vector<1x128xf32>
    %24 = vector.extract_strided_slice %21 {offsets = [0, 256], sizes = [1, 128], strides = [1, 1]} : vector<1x384xf32> to vector<1x128xf32>
    %25 = vector.extract_strided_slice %16 {offsets = [0, 384], sizes = [1, 128], strides = [1, 1]} : vector<1x512xf32> to vector<1x128xf32>
    %26 = arith.mulf %23, %10 : vector<1x128xf32>
    %27 = arith.mulf %22, %25 : vector<1x128xf32>
    %28 = arith.addf %26, %27 : vector<1x128xf32>
    %29 = math.tanh %28 : vector<1x128xf32>
    %30 = arith.mulf %24, %29 : vector<1x128xf32>
    %c1_i32 = arith.constant 1 : i32
    %31 = arith.index_cast %c1_i32 : i32 to index
    %c0_16 = arith.constant 0 : index
    %32 = vector.load %arg11[%31, %c0_16] : memref<8x512xf32, #tpu.memory_space<vmem>>, vector<1x512xf32>
    %c0_17 = arith.constant 0 : index
    %c0_18 = arith.constant 0 : index
    %33 = vector.load %arg2[%c0_17, %c0_18] : memref<128x512xf32, #tpu.memory_space<vmem>>, vector<128x512xf32>
    %cst_19 = arith.constant dense<0.000000e+00> : vector<1x512xf32>
    %34 = tpu.matmul %30, %33, %cst_19 {dimension_numbers = #tpu.dot_dimension_numbers<[1], [0], [0], [1], [0, 0, 1, 1], [], []>} : vector<1x128xf32>, vector<128x512xf32>, vector<1x512xf32> -> vector<1x512xf32>
    %35 = arith.addf %32, %34 : vector<1x512xf32>
    %36 = math.tanh %35 : vector<1x512xf32>
    %37 = vector.extract_strided_slice %36 {offsets = [0, 0], sizes = [1, 384], strides = [1, 1]} : vector<1x512xf32> to vector<1x384xf32>
    %cst_20 = arith.constant 5.000000e-01 : f32
    %38 = vector.broadcast %cst_20 : f32 to vector<1x384xf32>
    %39 = arith.mulf %37, %38 : vector<1x384xf32>
    %cst_21 = arith.constant 5.000000e-01 : f32
    %40 = vector.broadcast %cst_21 : f32 to vector<1x384xf32>
    %41 = arith.addf %39, %40 : vector<1x384xf32>
    %42 = vector.extract_strided_slice %41 {offsets = [0, 0], sizes = [1, 128], strides = [1, 1]} : vector<1x384xf32> to vector<1x128xf32>
    %43 = vector.extract_strided_slice %41 {offsets = [0, 128], sizes = [1, 128], strides = [1, 1]} : vector<1x384xf32> to vector<1x128xf32>
    %44 = vector.extract_strided_slice %41 {offsets = [0, 256], sizes = [1, 128], strides = [1, 1]} : vector<1x384xf32> to vector<1x128xf32>
    %45 = vector.extract_strided_slice %36 {offsets = [0, 384], sizes = [1, 128], strides = [1, 1]} : vector<1x512xf32> to vector<1x128xf32>
    %46 = arith.mulf %43, %28 : vector<1x128xf32>
    %47 = arith.mulf %42, %45 : vector<1x128xf32>
    %48 = arith.addf %46, %47 : vector<1x128xf32>
    %49 = math.tanh %48 : vector<1x128xf32>
    %50 = arith.mulf %44, %49 : vector<1x128xf32>
    %c2_i32 = arith.constant 2 : i32
    %51 = arith.index_cast %c2_i32 : i32 to index
    %c0_22 = arith.constant 0 : index
    %52 = vector.load %arg11[%51, %c0_22] : memref<8x512xf32, #tpu.memory_space<vmem>>, vector<1x512xf32>
    %c0_23 = arith.constant 0 : index
    %c0_24 = arith.constant 0 : index
    %53 = vector.load %arg2[%c0_23, %c0_24] : memref<128x512xf32, #tpu.memory_space<vmem>>, vector<128x512xf32>
    %cst_25 = arith.constant dense<0.000000e+00> : vector<1x512xf32>
    %54 = tpu.matmul %50, %53, %cst_25 {dimension_numbers = #tpu.dot_dimension_numbers<[1], [0], [0], [1], [0, 0, 1, 1], [], []>} : vector<1x128xf32>, vector<128x512xf32>, vector<1x512xf32> -> vector<1x512xf32>
    %55 = arith.addf %52, %54 : vector<1x512xf32>
    %56 = math.tanh %55 : vector<1x512xf32>
    %57 = vector.extract_strided_slice %56 {offsets = [0, 0], sizes = [1, 384], strides = [1, 1]} : vector<1x512xf32> to vector<1x384xf32>
    %cst_26 = arith.constant 5.000000e-01 : f32
    %58 = vector.broadcast %cst_26 : f32 to vector<1x384xf32>
    %59 = arith.mulf %57, %58 : vector<1x384xf32>
    %cst_27 = arith.constant 5.000000e-01 : f32
    %60 = vector.broadcast %cst_27 : f32 to vector<1x384xf32>
    %61 = arith.addf %59, %60 : vector<1x384xf32>
    %62 = vector.extract_strided_slice %61 {offsets = [0, 0], sizes = [1, 128], strides = [1, 1]} : vector<1x384xf32> to vector<1x128xf32>
    %63 = vector.extract_strided_slice %61 {offsets = [0, 128], sizes = [1, 128], strides = [1, 1]} : vector<1x384xf32> to vector<1x128xf32>
    %64 = vector.extract_strided_slice %61 {offsets = [0, 256], sizes = [1, 128], strides = [1, 1]} : vector<1x384xf32> to vector<1x128xf32>
    %65 = vector.extract_strided_slice %56 {offsets = [0, 384], sizes = [1, 128], strides = [1, 1]} : vector<1x512xf32> to vector<1x128xf32>
    %66 = arith.mulf %63, %48 : vector<1x128xf32>
    %67 = arith.mulf %62, %65 : vector<1x128xf32>
    %68 = arith.addf %66, %67 : vector<1x128xf32>
    %69 = math.tanh %68 : vector<1x128xf32>
    %70 = arith.mulf %64, %69 : vector<1x128xf32>
    %c3_i32 = arith.constant 3 : i32
    %71 = arith.index_cast %c3_i32 : i32 to index
    %c0_28 = arith.constant 0 : index
    %72 = vector.load %arg11[%71, %c0_28] : memref<8x512xf32, #tpu.memory_space<vmem>>, vector<1x512xf32>
    %c0_29 = arith.constant 0 : index
    %c0_30 = arith.constant 0 : index
    %73 = vector.load %arg2[%c0_29, %c0_30] : memref<128x512xf32, #tpu.memory_space<vmem>>, vector<128x512xf32>
    %cst_31 = arith.constant dense<0.000000e+00> : vector<1x512xf32>
    %74 = tpu.matmul %70, %73, %cst_31 {dimension_numbers = #tpu.dot_dimension_numbers<[1], [0], [0], [1], [0, 0, 1, 1], [], []>} : vector<1x128xf32>, vector<128x512xf32>, vector<1x512xf32> -> vector<1x512xf32>
    %75 = arith.addf %72, %74 : vector<1x512xf32>
    %76 = math.tanh %75 : vector<1x512xf32>
    %77 = vector.extract_strided_slice %76 {offsets = [0, 0], sizes = [1, 384], strides = [1, 1]} : vector<1x512xf32> to vector<1x384xf32>
    %cst_32 = arith.constant 5.000000e-01 : f32
    %78 = vector.broadcast %cst_32 : f32 to vector<1x384xf32>
    %79 = arith.mulf %77, %78 : vector<1x384xf32>
    %cst_33 = arith.constant 5.000000e-01 : f32
    %80 = vector.broadcast %cst_33 : f32 to vector<1x384xf32>
    %81 = arith.addf %79, %80 : vector<1x384xf32>
    %82 = vector.extract_strided_slice %81 {offsets = [0, 0], sizes = [1, 128], strides = [1, 1]} : vector<1x384xf32> to vector<1x128xf32>
    %83 = vector.extract_strided_slice %81 {offsets = [0, 128], sizes = [1, 128], strides = [1, 1]} : vector<1x384xf32> to vector<1x128xf32>
    %84 = vector.extract_strided_slice %81 {offsets = [0, 256], sizes = [1, 128], strides = [1, 1]} : vector<1x384xf32> to vector<1x128xf32>
    %85 = vector.extract_strided_slice %76 {offsets = [0, 384], sizes = [1, 128], strides = [1, 1]} : vector<1x512xf32> to vector<1x128xf32>
    %86 = arith.mulf %83, %68 : vector<1x128xf32>
    %87 = arith.mulf %82, %85 : vector<1x128xf32>
    %88 = arith.addf %86, %87 : vector<1x128xf32>
    %89 = math.tanh %88 : vector<1x128xf32>
    %90 = arith.mulf %84, %89 : vector<1x128xf32>
    %c4_i32 = arith.constant 4 : i32
    %91 = arith.index_cast %c4_i32 : i32 to index
    %c0_34 = arith.constant 0 : index
    %92 = vector.load %arg11[%91, %c0_34] : memref<8x512xf32, #tpu.memory_space<vmem>>, vector<1x512xf32>
    %c0_35 = arith.constant 0 : index
    %c0_36 = arith.constant 0 : index
    %93 = vector.load %arg2[%c0_35, %c0_36] : memref<128x512xf32, #tpu.memory_space<vmem>>, vector<128x512xf32>
    %cst_37 = arith.constant dense<0.000000e+00> : vector<1x512xf32>
    %94 = tpu.matmul %90, %93, %cst_37 {dimension_numbers = #tpu.dot_dimension_numbers<[1], [0], [0], [1], [0, 0, 1, 1], [], []>} : vector<1x128xf32>, vector<128x512xf32>, vector<1x512xf32> -> vector<1x512xf32>
    %95 = arith.addf %92, %94 : vector<1x512xf32>
    %96 = math.tanh %95 : vector<1x512xf32>
    %97 = vector.extract_strided_slice %96 {offsets = [0, 0], sizes = [1, 384], strides = [1, 1]} : vector<1x512xf32> to vector<1x384xf32>
    %cst_38 = arith.constant 5.000000e-01 : f32
    %98 = vector.broadcast %cst_38 : f32 to vector<1x384xf32>
    %99 = arith.mulf %97, %98 : vector<1x384xf32>
    %cst_39 = arith.constant 5.000000e-01 : f32
    %100 = vector.broadcast %cst_39 : f32 to vector<1x384xf32>
    %101 = arith.addf %99, %100 : vector<1x384xf32>
    %102 = vector.extract_strided_slice %101 {offsets = [0, 0], sizes = [1, 128], strides = [1, 1]} : vector<1x384xf32> to vector<1x128xf32>
    %103 = vector.extract_strided_slice %101 {offsets = [0, 128], sizes = [1, 128], strides = [1, 1]} : vector<1x384xf32> to vector<1x128xf32>
    %104 = vector.extract_strided_slice %101 {offsets = [0, 256], sizes = [1, 128], strides = [1, 1]} : vector<1x384xf32> to vector<1x128xf32>
    %105 = vector.extract_strided_slice %96 {offsets = [0, 384], sizes = [1, 128], strides = [1, 1]} : vector<1x512xf32> to vector<1x128xf32>
    %106 = arith.mulf %103, %88 : vector<1x128xf32>
    %107 = arith.mulf %102, %105 : vector<1x128xf32>
    %108 = arith.addf %106, %107 : vector<1x128xf32>
    %109 = math.tanh %108 : vector<1x128xf32>
    %110 = arith.mulf %104, %109 : vector<1x128xf32>
    %c5_i32 = arith.constant 5 : i32
    %111 = arith.index_cast %c5_i32 : i32 to index
    %c0_40 = arith.constant 0 : index
    %112 = vector.load %arg11[%111, %c0_40] : memref<8x512xf32, #tpu.memory_space<vmem>>, vector<1x512xf32>
    %c0_41 = arith.constant 0 : index
    %c0_42 = arith.constant 0 : index
    %113 = vector.load %arg2[%c0_41, %c0_42] : memref<128x512xf32, #tpu.memory_space<vmem>>, vector<128x512xf32>
    %cst_43 = arith.constant dense<0.000000e+00> : vector<1x512xf32>
    %114 = tpu.matmul %110, %113, %cst_43 {dimension_numbers = #tpu.dot_dimension_numbers<[1], [0], [0], [1], [0, 0, 1, 1], [], []>} : vector<1x128xf32>, vector<128x512xf32>, vector<1x512xf32> -> vector<1x512xf32>
    %115 = arith.addf %112, %114 : vector<1x512xf32>
    %116 = math.tanh %115 : vector<1x512xf32>
    %117 = vector.extract_strided_slice %116 {offsets = [0, 0], sizes = [1, 384], strides = [1, 1]} : vector<1x512xf32> to vector<1x384xf32>
    %cst_44 = arith.constant 5.000000e-01 : f32
    %118 = vector.broadcast %cst_44 : f32 to vector<1x384xf32>
    %119 = arith.mulf %117, %118 : vector<1x384xf32>
    %cst_45 = arith.constant 5.000000e-01 : f32
    %120 = vector.broadcast %cst_45 : f32 to vector<1x384xf32>
    %121 = arith.addf %119, %120 : vector<1x384xf32>
    %122 = vector.extract_strided_slice %121 {offsets = [0, 0], sizes = [1, 128], strides = [1, 1]} : vector<1x384xf32> to vector<1x128xf32>
    %123 = vector.extract_strided_slice %121 {offsets = [0, 128], sizes = [1, 128], strides = [1, 1]} : vector<1x384xf32> to vector<1x128xf32>
    %124 = vector.extract_strided_slice %121 {offsets = [0, 256], sizes = [1, 128], strides = [1, 1]} : vector<1x384xf32> to vector<1x128xf32>
    %125 = vector.extract_strided_slice %116 {offsets = [0, 384], sizes = [1, 128], strides = [1, 1]} : vector<1x512xf32> to vector<1x128xf32>
    %126 = arith.mulf %123, %108 : vector<1x128xf32>
    %127 = arith.mulf %122, %125 : vector<1x128xf32>
    %128 = arith.addf %126, %127 : vector<1x128xf32>
    %129 = math.tanh %128 : vector<1x128xf32>
    %130 = arith.mulf %124, %129 : vector<1x128xf32>
    %c6_i32 = arith.constant 6 : i32
    %131 = arith.index_cast %c6_i32 : i32 to index
    %c0_46 = arith.constant 0 : index
    %132 = vector.load %arg11[%131, %c0_46] : memref<8x512xf32, #tpu.memory_space<vmem>>, vector<1x512xf32>
    %c0_47 = arith.constant 0 : index
    %c0_48 = arith.constant 0 : index
    %133 = vector.load %arg2[%c0_47, %c0_48] : memref<128x512xf32, #tpu.memory_space<vmem>>, vector<128x512xf32>
    %cst_49 = arith.constant dense<0.000000e+00> : vector<1x512xf32>
    %134 = tpu.matmul %130, %133, %cst_49 {dimension_numbers = #tpu.dot_dimension_numbers<[1], [0], [0], [1], [0, 0, 1, 1], [], []>} : vector<1x128xf32>, vector<128x512xf32>, vector<1x512xf32> -> vector<1x512xf32>
    %135 = arith.addf %132, %134 : vector<1x512xf32>
    %136 = math.tanh %135 : vector<1x512xf32>
    %137 = vector.extract_strided_slice %136 {offsets = [0, 0], sizes = [1, 384], strides = [1, 1]} : vector<1x512xf32> to vector<1x384xf32>
    %cst_50 = arith.constant 5.000000e-01 : f32
    %138 = vector.broadcast %cst_50 : f32 to vector<1x384xf32>
    %139 = arith.mulf %137, %138 : vector<1x384xf32>
    %cst_51 = arith.constant 5.000000e-01 : f32
    %140 = vector.broadcast %cst_51 : f32 to vector<1x384xf32>
    %141 = arith.addf %139, %140 : vector<1x384xf32>
    %142 = vector.extract_strided_slice %141 {offsets = [0, 0], sizes = [1, 128], strides = [1, 1]} : vector<1x384xf32> to vector<1x128xf32>
    %143 = vector.extract_strided_slice %141 {offsets = [0, 128], sizes = [1, 128], strides = [1, 1]} : vector<1x384xf32> to vector<1x128xf32>
    %144 = vector.extract_strided_slice %141 {offsets = [0, 256], sizes = [1, 128], strides = [1, 1]} : vector<1x384xf32> to vector<1x128xf32>
    %145 = vector.extract_strided_slice %136 {offsets = [0, 384], sizes = [1, 128], strides = [1, 1]} : vector<1x512xf32> to vector<1x128xf32>
    %146 = arith.mulf %143, %128 : vector<1x128xf32>
    %147 = arith.mulf %142, %145 : vector<1x128xf32>
    %148 = arith.addf %146, %147 : vector<1x128xf32>
    %149 = math.tanh %148 : vector<1x128xf32>
    %150 = arith.mulf %144, %149 : vector<1x128xf32>
    %c7_i32 = arith.constant 7 : i32
    %151 = arith.index_cast %c7_i32 : i32 to index
    %c0_52 = arith.constant 0 : index
    %152 = vector.load %arg11[%151, %c0_52] : memref<8x512xf32, #tpu.memory_space<vmem>>, vector<1x512xf32>
    %c0_53 = arith.constant 0 : index
    %c0_54 = arith.constant 0 : index
    %153 = vector.load %arg2[%c0_53, %c0_54] : memref<128x512xf32, #tpu.memory_space<vmem>>, vector<128x512xf32>
    %cst_55 = arith.constant dense<0.000000e+00> : vector<1x512xf32>
    %154 = tpu.matmul %150, %153, %cst_55 {dimension_numbers = #tpu.dot_dimension_numbers<[1], [0], [0], [1], [0, 0, 1, 1], [], []>} : vector<1x128xf32>, vector<128x512xf32>, vector<1x512xf32> -> vector<1x512xf32>
    %155 = arith.addf %152, %154 : vector<1x512xf32>
    %156 = math.tanh %155 : vector<1x512xf32>
    %157 = vector.extract_strided_slice %156 {offsets = [0, 0], sizes = [1, 384], strides = [1, 1]} : vector<1x512xf32> to vector<1x384xf32>
    %cst_56 = arith.constant 5.000000e-01 : f32
    %158 = vector.broadcast %cst_56 : f32 to vector<1x384xf32>
    %159 = arith.mulf %157, %158 : vector<1x384xf32>
    %cst_57 = arith.constant 5.000000e-01 : f32
    %160 = vector.broadcast %cst_57 : f32 to vector<1x384xf32>
    %161 = arith.addf %159, %160 : vector<1x384xf32>
    %162 = vector.extract_strided_slice %161 {offsets = [0, 0], sizes = [1, 128], strides = [1, 1]} : vector<1x384xf32> to vector<1x128xf32>
    %163 = vector.extract_strided_slice %161 {offsets = [0, 128], sizes = [1, 128], strides = [1, 1]} : vector<1x384xf32> to vector<1x128xf32>
    %164 = vector.extract_strided_slice %161 {offsets = [0, 256], sizes = [1, 128], strides = [1, 1]} : vector<1x384xf32> to vector<1x128xf32>
    %165 = vector.extract_strided_slice %156 {offsets = [0, 384], sizes = [1, 128], strides = [1, 1]} : vector<1x512xf32> to vector<1x128xf32>
    %166 = arith.mulf %163, %148 : vector<1x128xf32>
    %167 = arith.mulf %162, %165 : vector<1x128xf32>
    %168 = arith.addf %166, %167 : vector<1x128xf32>
    %169 = math.tanh %168 : vector<1x128xf32>
    %170 = arith.mulf %164, %169 : vector<1x128xf32>
    %c8_i32 = arith.constant 8 : i32
    %c0_58 = arith.constant 0 : index
    %c0_59 = arith.constant 0 : index
    %171 = vector.load %arg9[%c0_58, %c0_59] : memref<1x128xf32, #tpu.memory_space<vmem>>, vector<1x128xf32>
    tpu.vector_store %arg9[%c0_58, %c0_59], %170 {strides = array<i32>} : memref<1x128xf32, #tpu.memory_space<vmem>>, vector<1x128xf32>,
    %c0_60 = arith.constant 0 : index
    %c0_61 = arith.constant 0 : index
    %172 = vector.load %arg10[%c0_60, %c0_61] : memref<1x128xf32, #tpu.memory_space<vmem>>, vector<1x128xf32>
    tpu.vector_store %arg10[%c0_60, %c0_61], %168 {strides = array<i32>} : memref<1x128xf32, #tpu.memory_space<vmem>>, vector<1x128xf32>,
    %c0_62 = arith.constant 0 : index
    %c0_63 = arith.constant 0 : index
    %173 = vector.load %arg4[%c0_62, %c0_63] : memref<1x128xf32, #tpu.memory_space<vmem>>, vector<1x128xf32>
    %174 = arith.mulf %170, %173 : vector<1x128xf32>
    %cst_64 = arith.constant dense<0.000000e+00> : vector<1xf32>
    %175 = vector.multi_reduction <add>, %174, %cst_64 [1] : vector<1x128xf32> to vector<1xf32>
    %176 = vector.shape_cast %175 : vector<1xf32> to vector<1x1xf32>
    %c0_65 = arith.constant 0 : index
    %177 = memref.load %arg5[%c0_65] : memref<1xf32, #tpu.memory_space<smem>>
    %178 = vector.broadcast %177 : f32 to vector<1x1xf32>
    %179 = arith.addf %176, %178 : vector<1x1xf32>
    %c0_66 = arith.constant 0 : index
    %c0_67 = arith.constant 0 : index
    %180 = vector.load %arg8[%c0_66, %c0_67] : memref<1x1xf32, #tpu.memory_space<vmem>>, vector<1x1xf32>
    tpu.vector_store %arg8[%c0_66, %c0_67], %179 {strides = array<i32>} : memref<1x1xf32, #tpu.memory_space<vmem>>, vector<1x1xf32>,
    return
  }
}

</mosaic_0001>

<bundles_post_ra>
// kernel: _lstm_forward_jit.1
= control target key start
LH: loop header
LB: loop body
LE: loop exit
PB: predicated region body
PF: predicated region fallthrough
CT: control target
= control target key end

     0   :  { %17 = vsyncpa [#allocation5], 0  ;;  %s2894_s0 = inlined_call_operand.vmem [shape: f32[8,1], index: 0, kind: input, shape index: {}]   ;;  %s2895_s1 = inlined_call_operand.vmem [shape: f32[1,512], index: 1, kind: input, shape index: {}]   ;;  %s2896_s2 = inlined_call_operand.hbm [shape: f32[128,512], index: 2, kind: input, shape index: {}]   ;;  %s2897_s3 = inlined_call_operand.vmem [shape: f32[1,512], index: 3, kind: input, shape index: {}]   ;;  %s2898_s4 = inlined_call_operand.vmem [shape: f32[1,128], index: 4, kind: input, shape index: {}]   ;;  %s2899_s5 = inlined_call_operand.<no memory space> [shape: f32[1], index: 5, kind: input, shape index: {}]   ;;  %s2900_s6 = inlined_call_operand.vmem [shape: f32[1,128], index: 6, kind: input, shape index: {}]   ;;  %s2901_s7 = inlined_call_operand.vmem [shape: f32[1,128], index: 7, kind: input, shape index: {}]   ;;  %s2902_s8 = inlined_call_operand.hbm [shape: f32[1,1], index: 8, kind: output, shape index: {0}]   ;;  %s2903_s9 = inlined_call_operand.hbm [shape: f32[1,128], index: 9, kind: output, shape index: {1}]   ;;  %s2904_s10 = inlined_call_operand.hbm [shape: f32[1,128], index: 10, kind: output, shape index: {2}]  }
   0x1   :  { %18 = vsyncpa [#allocation6], 0 }
   0x2   :  { %19 = vsyncpa [#allocation9], 0  ;;  %s2399_s13 = smov [#allocation4]   ;;  %s2305_s17 = scalar_lea.hbm %s2896_s2, 8192 }
   0x3   :  { %s29_s14 = sshll.u32 %s2399_s13, 4  ;;  %p2306_p0 = scmp.ne.s32.totalorder %s2896_s2, %s2305_s17  ;;  %s30_s14 = int_to_ptr.vmem [resolvable:$true] %s29_s14 }
   0x4   :  { %p2309_p1 = scmp.lt.u32.totalorder %s2305_s17, %s2896_s2 }
   0x6   :  { %p2311_p2 = pnand %p2309_p1, %p2306_p0 }
   0x8   :  { %2314 = shalt.err (!%p2311_p2)
}
   0x9   :  { %s2315_s22 = scalar_lea.vmem %s30_s14, 8192  ;;  %p2320_p4 = scmp.lt.s32.totalorder %s30_s14, %s30_s14 }
   0xa   :  { %p2316_p3 = scmp.ne.s32.totalorder %s30_s14, %s2315_s22  ;;  %p2321_p5 = scmp.lt.s32.totalorder %s2315_s22, %s2315_s22 }
   0xc   :  { %p2322_p6 = por %p2321_p5, %p2320_p4 }
   0xe   :  { %p2323_p7 = pnand %p2322_p6, %p2316_p3 }
  0x10   :  { %2326 = shalt.err (!%p2323_p7)
}
  0x11   :  { %s2400_s23 = smov 512   ;;  %s2401_s24 = smov 32  }
  0x12   :  { %35 = dma.hbm_to_vmem [thread:$0]  %s2896_s2, 8192, %s30_s14, [#allocation5], %s2400_s23, %s2400_s23, %s2401_s24  }
  0x13   :  { %2393 = dma.done.wait [#allocation5], 8192  }
  0x14   :  { %2394 = vsyncadd [#allocation5], 4294959104  ;;  %v2402_v0 = vmov 0.0   ;;  %v2403_v1 = vmov 0   ;;  %v115_v2 = vld [vmem:[#allocation4 + $0x8] sm:$0xff]  ;;  %v117_v4 = vld [vmem:[#allocation4 + $0x18] sm:$0xff] }
  0x15   :  { %242 = vmatprep.mubr.f32.mxu0 %v2402_v0  ;;  %313 = vmatprep.mubr.f32.mxu1 %v2402_v0  ;;  %v119_v3 = vld [vmem:[#allocation4 + $0x28] sm:$0xff]  ;;  %v121_v6 = vld [vmem:[#allocation4 + $0x38] sm:$0xff]  ;;  %v114_v7 = vld [vmem:[#allocation4] sm:$0xff]  ;;  %vm1700_vm0 = vcmask 1040384   ;;  %s2405_s13 = smov [#allocation8]  }
  0x16   :  { %2272 = vset.pattern.permute.xlu0 %v2403_v1  ;;  %v2477_v5 = vpack.c.bf16 %v119_v3, %v115_v2  ;;  %v118_v8 = vld [vmem:[#allocation4 + $0x20] sm:$0xff]  ;;  %v2479_v9 = vpack.c.bf16 %v121_v6, %v117_v4  ;;  %v116_v11 = vld [vmem:[#allocation4 + $0x10] sm:$0xff]  ;;  %v123_v13 = vld [vmem:[#allocation4 + $0x48] sm:$0xff]  ;;  %s1725_s14 = sshll.u32 %s2405_s13, 4  ;;  %s1726_s14 = int_to_ptr.vmem [resolvable:$true] %s1725_s14 }
  0x17   :  { %v2481_v10 = vpack.c.bf16 %v118_v8, %v114_v7  ;;  %v120_v12 = vld [vmem:[#allocation4 + $0x30] sm:$0xff]  ;;  %v127_v15 = vld [vmem:[#allocation4 + $0x68] sm:$0xff]  ;;  %v125_v16 = vld [vmem:[#allocation4 + $0x58] sm:$0xff]  ;;  %s2327_s15 = scalar_lea.vmem %s1726_s14, 16  ;;  %s2331_s16 = scalar_lea.vmem %s1726_s14, 32 }
  0x18   :  { %1752 = vmatprep.subr.bf16.mxu0 %v2477_v5  ;;  %v2484_v14 = vpack.c.bf16 %v120_v12, %v116_v11  ;;  %v129_v17 = vld [vmem:[#allocation4 + $0x78] sm:$0xff]  ;;  %1784 = vmatprep.subr.bf16.mxu1 %v2479_v9  ;;  %v2488_v18 = vpack.c.bf16 %v127_v15, %v123_v13  ;;  %v122_v20 = vld [vmem:[#allocation4 + $0x40] sm:$0xff]  ;;  %v124_v22 = vld [vmem:[#allocation4 + $0x50] sm:$0xff]  ;;  %p2328_p8 = scmp.ne.s32.totalorder %s1726_s14, %s2327_s15  ;;  %p2332_p9 = scmp.lt.s32.totalorder %s1726_s14, %s1726_s14 }
  0x19   :  { %1754 = vmatpush1.bf16.msra.mxu0 %v2481_v10  ;;  %v2490_v19 = vpack.c.bf16 %v129_v17, %v125_v16  ;;  %v126_v21 = vld [vmem:[#allocation4 + $0x60] sm:$0xff]  ;;  %v128_v24 = vld [vmem:[#allocation4 + $0x70] sm:$0xff]  ;;  %v131_v25 = vld [vmem:[#allocation4 + $0x88] sm:$0xff]  ;;  %p2333_p10 = scmp.lt.s32.totalorder %s2331_s16, %s2327_s15 }
  0x1a   :  { %1786 = vmatpush1.bf16.msra.mxu1 %v2484_v14  ;;  %v2493_v23 = vpack.c.bf16 %v126_v21, %v122_v20  ;;  %v135_v26 = vld [vmem:[#allocation4 + $0xa8] sm:$0xff]  ;;  %1756 = vmatprep.subr.bf16.mxu0 %v2488_v18  ;;  %v2497_v27 = vpack.c.bf16 %v128_v24, %v124_v22  ;;  %v133_v29 = vld [vmem:[#allocation4 + $0x98] sm:$0xff]  ;;  %v130_v31 = vld [vmem:[#allocation4 + $0x80] sm:$0xff] }
  0x1b   :  { %1788 = vmatprep.subr.bf16.mxu1 %v2490_v19  ;;  %v2499_v28 = vpack.c.bf16 %v135_v26, %v131_v25  ;;  %v137_v30 = vld [vmem:[#allocation4 + $0xb8] sm:$0xff]  ;;  %v134_v33 = vld [vmem:[#allocation4 + $0xa0] sm:$0xff]  ;;  %v132_v34 = vld [vmem:[#allocation4 + $0x90] sm:$0xff]  ;;  %p2334_p11 = por %p2333_p10, %p2332_p9 }
  0x1c   :  { %v2501_v32 = vpack.c.bf16 %v137_v30, %v133_v29  ;;  %v136_v35 = vld [vmem:[#allocation4 + $0xb0] sm:$0xff]  ;;  %v2504_v36 = vpack.c.bf16 %v134_v33, %v130_v31  ;;  %v139_v37 = vld [vmem:[#allocation4 + $0xc8] sm:$0xff]  ;;  %v141_v39 = vld [vmem:[#allocation4 + $0xd8] sm:$0xff] }
  0x1d   :  { %1758 = vmatpush1.bf16.msra.mxu0 %v2493_v23  ;;  %v143_v38 = vld [vmem:[#allocation4 + $0xe8] sm:$0xff]  ;;  %v2508_v40 = vpack.c.bf16 %v136_v35, %v132_v34  ;;  %v145_v42 = vld [vmem:[#allocation4 + $0xf8] sm:$0xff]  ;;  %v138_v43 = vld [vmem:[#allocation4 + $0xc0] sm:$0xff]  ;;  %p2335_p12 = pnand %p2334_p11, %p2328_p8 }
  0x1e   :  { %1790 = vmatpush1.bf16.msra.mxu1 %v2497_v27  ;;  %1760 = vmatprep.subr.bf16.mxu0 %v2499_v28  ;;  %v2510_v41 = vpack.c.bf16 %v143_v38, %v139_v37  ;;  %v142_v44 = vld [vmem:[#allocation4 + $0xe0] sm:$0xff]  ;;  %v2513_v45 = vpack.c.bf16 %v145_v42, %v141_v39  ;;  %v140_v46 = vld [vmem:[#allocation4 + $0xd0] sm:$0xff]  ;;  %v147_v48 = vld [vmem:[#allocation4 + $0x108] sm:$0xff] }
  0x1f   :  { %1792 = vmatprep.subr.bf16.mxu1 %v2501_v32  ;;  %v144_v47 = vld [vmem:[#allocation4 + $0xf0] sm:$0xff]  ;;  %v151_v49 = vld [vmem:[#allocation4 + $0x128] sm:$0xff]  ;;  %v149_v50 = vld [vmem:[#allocation4 + $0x118] sm:$0xff]  ;;  %v2516_v52 = vpack.c.bf16 %v142_v44, %v138_v43 }
  0x20   :  { %v153_v51 = vld [vmem:[#allocation4 + $0x138] sm:$0xff]  ;;  %v2520_v53 = vpack.c.bf16 %v144_v47, %v140_v46  ;;  %v2522_v54 = vpack.c.bf16 %v151_v49, %v147_v48  ;;  %v146_v55 = vld [vmem:[#allocation4 + $0x100] sm:$0xff]  ;;  %v148_v57 = vld [vmem:[#allocation4 + $0x110] sm:$0xff] }
  0x21   :  { %1762 = vmatpush1.bf16.msra.mxu0 %v2504_v36  ;;  %v150_v56 = vld [vmem:[#allocation4 + $0x120] sm:$0xff]  ;;  %v2525_v58 = vpack.c.bf16 %v153_v51, %v149_v50  ;;  %v152_v59 = vld [vmem:[#allocation4 + $0x130] sm:$0xff]  ;;  %v155_v60 = vld [vmem:[#allocation4 + $0x148] sm:$0xff]  ;;  %v57_v51 = vlaneseq }
  0x22   :  { %1794 = vmatpush1.bf16.msra.mxu1 %v2508_v40  ;;  %1764 = vmatprep.subr.bf16.mxu0 %v2510_v41  ;;  %v159_v61 = vld [vmem:[#allocation4 + $0x168] sm:$0xff]  ;;  %v157_v62 = vld [vmem:[#allocation4 + $0x158] sm:$0xff]  ;;  %v2528_v1 = vpack.c.bf16 %v150_v56, %v146_v55  ;;  %v2532_v2 = vpack.c.bf16 %v152_v59, %v148_v57  ;;  %v154_v4 = vld [vmem:[#allocation4 + $0x140] sm:$0xff] }
  0x23   :  { %1796 = vmatprep.subr.bf16.mxu1 %v2513_v45  ;;  %v161_v63 = vld [vmem:[#allocation4 + $0x178] sm:$0xff]  ;;  %v2534_v3 = vpack.c.bf16 %v159_v61, %v155_v60  ;;  %v158_v6 = vld [vmem:[#allocation4 + $0x160] sm:$0xff]  ;;  %v156_v7 = vld [vmem:[#allocation4 + $0x150] sm:$0xff]  ;;  %v58_v55 = vshrl.u32 %v57_v51, 7 }
  0x24   :  { %v2537_v8 = vpack.c.bf16 %v161_v63, %v157_v62  ;;  %v160_v11 = vld [vmem:[#allocation4 + $0x170] sm:$0xff]  ;;  %v163_v12 = vld [vmem:[#allocation4 + $0x188] sm:$0xff]  ;;  %v165_v15 = vld [vmem:[#allocation4 + $0x198] sm:$0xff]  ;;  %v2540_v17 = vpack.c.bf16 %v158_v6, %v154_v4 }
  0x25   :  { %1766 = vmatpush1.bf16.msra.mxu0 %v2516_v52  ;;  %v167_v13 = vld [vmem:[#allocation4 + $0x1a8] sm:$0xff]  ;;  %v169_v16 = vld [vmem:[#allocation4 + $0x1b8] sm:$0xff]  ;;  %v162_v20 = vld [vmem:[#allocation4 + $0x180] sm:$0xff]  ;;  %v2544_v21 = vpack.c.bf16 %v160_v11, %v156_v7  ;;  %v59_v56 = vsub.s32 0, %v58_v55  ;;  %v63_v57 = vsub.s32 1, %v58_v55  ;;  %v67_v59 = vsub.s32 2, %v58_v55 }
  0x26   :  { %1798 = vmatpush1.bf16.msra.mxu1 %v2520_v53  ;;  %1768 = vmatprep.subr.bf16.mxu0 %v2522_v54  ;;  %v2546_v22 = vpack.c.bf16 %v167_v13, %v163_v12  ;;  %v166_v24 = vld [vmem:[#allocation4 + $0x1a0] sm:$0xff]  ;;  %v164_v25 = vld [vmem:[#allocation4 + $0x190] sm:$0xff]  ;;  %v2552_v29 = vpack.c.bf16 %v169_v16, %v165_v15  ;;  %v171_v31 = vld [vmem:[#allocation4 + $0x1c8] sm:$0xff]  ;;  %v71_v60 = vsub.s32 3, %v58_v55 }
  0x27   :  { %1800 = vmatprep.subr.bf16.mxu1 %v2525_v58  ;;  %v49_v26 = vld [vmem:[%s2894_s0] sm:$0xff]  ;;  %v168_v30 = vld [vmem:[#allocation4 + $0x1b0] sm:$0xff]  ;;  %v175_v33 = vld [vmem:[#allocation4 + $0x1e8] sm:$0xff]  ;;  %v2555_v37 = vpack.c.bf16 %v166_v24, %v162_v20 }
  0x28   :  { %53 = vperm.xlu0 %2272, %v49_v26   ;;  %v173_v34 = vld [vmem:[#allocation4 + $0x1d8] sm:$0xff]  ;;  %v2559_v38 = vpack.c.bf16 %v168_v30, %v164_v25  ;;  %v2561_v39 = vpack.c.bf16 %v175_v33, %v171_v31  ;;  %v170_v42 = vld [vmem:[#allocation4 + $0x1c0] sm:$0xff]  ;;  %v172_v46 = vld [vmem:[#allocation4 + $0x1d0] sm:$0xff] }
  0x29   :  { %1770 = vmatpush1.bf16.msra.mxu0 %v2528_v1  ;;  %v177_v35 = vld [vmem:[#allocation4 + $0x1f8] sm:$0xff]  ;;  %v174_v43 = vld [vmem:[#allocation4 + $0x1e0] sm:$0xff]  ;;  %v176_v47 = vld [vmem:[#allocation4 + $0x1f0] sm:$0xff] }
  0x2a   :  { %1802 = vmatpush1.bf16.msra.mxu1 %v2532_v2  ;;  %1772 = vmatprep.subr.bf16.mxu0 %v2534_v3  ;;  %v2564_v44 = vpack.c.bf16 %v177_v35, %v173_v34  ;;  %v2567_v48 = vpack.c.bf16 %v174_v43, %v170_v42  ;;  %v2571_v49 = vpack.c.bf16 %v176_v47, %v172_v46  ;;  %v111_v50 = vld [vmem:[%s2900_s6] sm:$0x1]  ;;  %v2404_v35 = vmov 1966171168  }
  0x2b   :  { %1804 = vmatprep.subr.bf16.mxu1 %v2537_v8  ;;  %v50_v61 = vld [vmem:[%s2895_s1] sm:$0xf]  ;;  %v327_v42 = vunpack.c.l.s4 %v2404_v35 }
  0x2c   :  { %v81_v62 = vld [vmem:[%s2897_s3] sm:$0xf]  ;;  %v60_v63 = vrot.slane %v50_v61, %v59_v56  ;;  %v64_v4 = vrot.slane %v50_v61, %v63_v57  ;;  %v68_v6 = vrot.slane %v50_v61, %v67_v59  ;;  %v72_v7 = vrot.slane %v50_v61, %v71_v60 }
  0x2d   :  { %1774 = vmatpush1.bf16.msra.mxu0 %v2540_v17  ;;  %v86_v11 = vrot.slane %v81_v62, %v59_v56  ;;  %v90_v12 = vrot.slane %v81_v62, %v63_v57  ;;  %v94_v13 = vrot.slane %v81_v62, %v67_v59  ;;  %v98_v15 = vrot.slane %v81_v62, %v71_v60 }
  0x2e   :  { %1806 = vmatpush1.bf16.msra.mxu1 %v2544_v21  ;;  %1776 = vmatprep.subr.bf16.mxu0 %v2546_v22  ;;  %v328_v43 = vunpack.c.0.s8 %v327_v42 }
  0x2f   :  { %1808 = vmatprep.subr.bf16.mxu1 %v2552_v29 }
  0x30   :  { %v2621_v46 = vsub.s32 %v328_v43, %v58_v55 }
  0x31   :  { %1778 = vmatpush1.bf16.msra.mxu0 %v2555_v37 }
  0x32   :  { %1810 = vmatpush1.bf16.msra.mxu1 %v2559_v38  ;;  %1780 = vmatprep.subr.bf16.mxu0 %v2561_v39 }
  0x33   :  { %1812 = vmatprep.subr.bf16.mxu1 %v2564_v44 }
  0x35   :  { %1782 = vmatpush1.bf16.msra.mxu0 %v2567_v48 }
  0x36   :  { %1814 = vmatpush1.bf16.msra.mxu1 %v2571_v49  ;;  %1816 = vmatprep.subr.bf16.mxu0 %v2477_v5 }
  0x37   :  { %1848 = vmatprep.subr.bf16.mxu1 %v2479_v9 }
  0x38   :  { %243 = vmatmul.mubr.f32.vlgmr.msra.gmra.mrb[0].mxu0 %v111_v50 }
  0x39   :  { %314 = vmatmul.mubr.f32.vlgmr.msra.gmra.mrb[0].mxu1 %v111_v50  ;;  %1818 = vmatpush1.bf16.msra.mxu0 %v2481_v10 }
  0x3a   :  { %1850 = vmatpush1.bf16.msra.mxu1 %v2484_v14  ;;  %1820 = vmatprep.subr.bf16.mxu0 %v2488_v18 }
  0x3b   :  { %1852 = vmatprep.subr.bf16.mxu1 %v2490_v19  ;;  %432 = vmatprep.mubr.f32.mxu0 %v2402_v0 }
  0x3c   :  { %503 = vmatprep.mubr.f32.mxu1 %v2402_v0 }
  0x3d   :  { %1822 = vmatpush1.bf16.msra.mxu0 %v2493_v23 }
  0x3e   :  { %1854 = vmatpush1.bf16.msra.mxu1 %v2497_v27  ;;  %1824 = vmatprep.subr.bf16.mxu0 %v2499_v28 }
  0x3f   :  { %1856 = vmatprep.subr.bf16.mxu1 %v2501_v32 }
  0x41   :  { %1826 = vmatpush1.bf16.msra.mxu0 %v2504_v36 }
  0x42   :  { %1858 = vmatpush1.bf16.msra.mxu1 %v2508_v40  ;;  %1828 = vmatprep.subr.bf16.mxu0 %v2510_v41 }
  0x43   :  { %1860 = vmatprep.subr.bf16.mxu1 %v2513_v45 }
  0x45   :  { %1830 = vmatpush1.bf16.msra.mxu0 %v2516_v52 }
  0x46   :  { %1862 = vmatpush1.bf16.msra.mxu1 %v2520_v53  ;;  %1832 = vmatprep.subr.bf16.mxu0 %v2522_v54 }
  0x47   :  { %1864 = vmatprep.subr.bf16.mxu1 %v2525_v58 }
  0x49   :  { %1834 = vmatpush1.bf16.msra.mxu0 %v2528_v1 }
  0x4a   :  { %1866 = vmatpush1.bf16.msra.mxu1 %v2532_v2  ;;  %1836 = vmatprep.subr.bf16.mxu0 %v2534_v3 }
  0x4b   :  { %1868 = vmatprep.subr.bf16.mxu1 %v2537_v8 }
  0x4d   :  { %1838 = vmatpush1.bf16.msra.mxu0 %v2540_v17 }
  0x4e   :  { %1870 = vmatpush1.bf16.msra.mxu1 %v2544_v21  ;;  %1840 = vmatprep.subr.bf16.mxu0 %v2546_v22 }
  0x4f   :  { %1872 = vmatprep.subr.bf16.mxu1 %v2552_v29 }
  0x51   :  { %1842 = vmatpush1.bf16.msra.mxu0 %v2555_v37 }
  0x52   :  { %1874 = vmatpush1.bf16.msra.mxu1 %v2559_v38  ;;  %1844 = vmatprep.subr.bf16.mxu0 %v2561_v39 }
  0x53   :  { %1876 = vmatprep.subr.bf16.mxu1 %v2564_v44 }
  0x55   :  { %1846 = vmatpush1.bf16.msra.mxu0 %v2567_v48 }
  0x56   :  { %1878 = vmatpush1.bf16.msra.mxu1 %v2571_v49  ;;  %1880 = vmatprep.subr.bf16.mxu0 %v2477_v5 }
  0x57   :  { %1912 = vmatprep.subr.bf16.mxu1 %v2479_v9 }
  0xa7   :  { %v54_v16 = vpop.permute.xlu0 %53 }
  0xa8   :  { %v77_v20 = vmul.f32 %v60_v63, %v54_v16  ;;  %v78_v24 = vmul.f32 %v64_v4, %v54_v16  ;;  %v79_v25 = vmul.f32 %v68_v6, %v54_v16  ;;  %v80_v26 = vmul.f32 %v72_v7, %v54_v16 }
  0xaa   :  { %v103_v30 = vadd.f32 %v86_v11, %v77_v20  ;;  %v104_v31 = vadd.f32 %v90_v12, %v78_v24  ;;  %v105_v33 = vadd.f32 %v94_v13, %v79_v25  ;;  %v106_v34 = vadd.f32 %v98_v15, %v80_v26  ;;  %v112_v12 = vld [vmem:[%s2901_s7] sm:$0x1] }
  0xac   :  { %107 = vst [vmem:[#allocation2] sm:$0xff] %v103_v30  ;;  %108 = vst [vmem:[#allocation2 + $0x8] sm:$0xff] %v104_v31 }
  0xad   :  { %109 = vst [vmem:[#allocation2 + $0x10] sm:$0xff] %v105_v33  ;;  %110 = vst [vmem:[#allocation2 + $0x18] sm:$0xff] %v106_v34 }
  0xb4   :  { %v113_v63 = vld [vmem:[#allocation2] ss:$8 sm:$0xf] }
 0x10b   :  { %v244_v47 = vpop.f32.mrb[0].mxu0 }
 0x10c   :  { %v315_v50 = vpop.f32.mrb[0].mxu1  ;;  %v246_v51 = vpop.f32.mrb[1].mxu0 }
 0x10d   :  { %v324_v56 = vcombine.low %v244_v47, %v246_v51  ;;  %v317_v57 = vpop.f32.mrb[1].mxu1 }
 0x10e   :  { %v325_v59 = vcombine.low %v315_v50, %v317_v57  ;;  %v367_v57 = vld [vmem:[#allocation2 + $0x1] ss:$8 sm:$0xf] }
 0x10f   :  { %v332_v60 = vrot.slane %v324_v56, %v2621_v46 }
 0x110   :  { %v339_v61 = vrot.slane %v325_v59, %v2621_v46 }
 0x112   :  { %v340_v62 = vcombine.low %v332_v60, %v339_v61 }
 0x114   :  { %v347_v4 = vrot.slane %v340_v62, %v2621_v46 }
 0x116   :  { %v349_v6 = vadd.f32 %v347_v4, %v113_v63 }
 0x118   :  { %2273 = vtanh.f32 %v349_v6 }
 0x122   :  { %v2274_v7 = vpop.eup %2273 }
 0x123   :  { %v351_v11 = vmul.f32 0.5, %v2274_v7  ;;  %v358_v13 = vrot.slane %v2274_v7, 3 }
 0x125   :  { %v352_v55 = vadd.f32 0.5, %v351_v11 }
 0x127   :  { %v354_v15 = vrot.slane %v352_v55, 1  ;;  %v360_v20 = vmul.f32 %v358_v13, %v352_v55  ;;  %v363_v25 = vrot.slane %v352_v55, 2 }
 0x129   :  { %v356_v16 = vmul.f32 %v354_v15, %v112_v12 }
 0x12b   :  { %v361_v24 = vadd.f32 %v360_v20, %v356_v16 }
 0x12d   :  { %2275 = vtanh.f32 %v361_v24 }
 0x137   :  { %v2276_v26 = vpop.eup %2275 }
 0x138   :  { %v365_v30 = vmul.f32 %v2276_v26, %v363_v25 }
 0x13a   :  { %433 = vmatmul.mubr.f32.vlgmr.msra.gmra.mrb[2].mxu0 %v365_v30  ;;  %504 = vmatmul.mubr.f32.vlgmr.msra.gmra.mrb[2].mxu1 %v365_v30 }
 0x13b   :  { %1882 = vmatpush1.bf16.msra.mxu0 %v2481_v10  ;;  %1914 = vmatpush1.bf16.msra.mxu1 %v2484_v14 }
 0x13c   :  { %1884 = vmatprep.subr.bf16.mxu0 %v2488_v18  ;;  %1916 = vmatprep.subr.bf16.mxu1 %v2490_v19 }
 0x13d   :  { %622 = vmatprep.mubr.f32.mxu0 %v2402_v0  ;;  %693 = vmatprep.mubr.f32.mxu1 %v2402_v0 }
 0x13f   :  { %1886 = vmatpush1.bf16.msra.mxu0 %v2493_v23  ;;  %1918 = vmatpush1.bf16.msra.mxu1 %v2497_v27 }
 0x140   :  { %1888 = vmatprep.subr.bf16.mxu0 %v2499_v28  ;;  %1920 = vmatprep.subr.bf16.mxu1 %v2501_v32 }
 0x143   :  { %1890 = vmatpush1.bf16.msra.mxu0 %v2504_v36  ;;  %1922 = vmatpush1.bf16.msra.mxu1 %v2508_v40 }
 0x144   :  { %1892 = vmatprep.subr.bf16.mxu0 %v2510_v41  ;;  %1924 = vmatprep.subr.bf16.mxu1 %v2513_v45 }
 0x147   :  { %1894 = vmatpush1.bf16.msra.mxu0 %v2516_v52  ;;  %1926 = vmatpush1.bf16.msra.mxu1 %v2520_v53 }
 0x148   :  { %1896 = vmatprep.subr.bf16.mxu0 %v2522_v54  ;;  %1928 = vmatprep.subr.bf16.mxu1 %v2525_v58 }
 0x14b   :  { %1898 = vmatpush1.bf16.msra.mxu0 %v2528_v1  ;;  %1930 = vmatpush1.bf16.msra.mxu1 %v2532_v2 }
 0x14c   :  { %1900 = vmatprep.subr.bf16.mxu0 %v2534_v3  ;;  %1932 = vmatprep.subr.bf16.mxu1 %v2537_v8 }
 0x14f   :  { %1902 = vmatpush1.bf16.msra.mxu0 %v2540_v17  ;;  %1934 = vmatpush1.bf16.msra.mxu1 %v2544_v21 }
 0x150   :  { %1904 = vmatprep.subr.bf16.mxu0 %v2546_v22  ;;  %1936 = vmatprep.subr.bf16.mxu1 %v2552_v29 }
 0x153   :  { %1906 = vmatpush1.bf16.msra.mxu0 %v2555_v37  ;;  %1938 = vmatpush1.bf16.msra.mxu1 %v2559_v38 }
 0x154   :  { %1908 = vmatprep.subr.bf16.mxu0 %v2561_v39  ;;  %1940 = vmatprep.subr.bf16.mxu1 %v2564_v44 }
 0x157   :  { %1910 = vmatpush1.bf16.msra.mxu0 %v2567_v48  ;;  %1942 = vmatpush1.bf16.msra.mxu1 %v2571_v49 }
 0x158   :  { %1944 = vmatprep.subr.bf16.mxu0 %v2477_v5  ;;  %1976 = vmatprep.subr.bf16.mxu1 %v2479_v9 }
 0x20d   :  { %v434_v31 = vpop.f32.mrb[2].mxu0  ;;  %v505_v33 = vpop.f32.mrb[2].mxu1 }
 0x20e   :  { %v436_v34 = vpop.f32.mrb[3].mxu0  ;;  %v507_v35 = vpop.f32.mrb[3].mxu1 }
 0x20f   :  { %v514_v42 = vcombine.low %v434_v31, %v436_v34  ;;  %v515_v43 = vcombine.low %v505_v33, %v507_v35  ;;  %v557_v35 = vld [vmem:[#allocation2 + $0x2] ss:$8 sm:$0xf] }
 0x211   :  { %v522_v47 = vrot.slane %v514_v42, %v2621_v46  ;;  %v529_v50 = vrot.slane %v515_v43, %v2621_v46 }
 0x213   :  { %v530_v51 = vcombine.low %v522_v47, %v529_v50 }
 0x215   :  { %v537_v56 = vrot.slane %v530_v51, %v2621_v46 }
 0x217   :  { %v539_v59 = vadd.f32 %v537_v56, %v367_v57 }
 0x219   :  { %2277 = vtanh.f32 %v539_v59 }
 0x223   :  { %v2278_v60 = vpop.eup %2277 }
 0x224   :  { %v541_v61 = vmul.f32 0.5, %v2278_v60  ;;  %v548_v63 = vrot.slane %v2278_v60, 3 }
 0x226   :  { %v542_v62 = vadd.f32 0.5, %v541_v61 }
 0x228   :  { %v544_v4 = vrot.slane %v542_v62, 1  ;;  %v550_v7 = vmul.f32 %v548_v63, %v542_v62  ;;  %v553_v55 = vrot.slane %v542_v62, 2 }
 0x22a   :  { %v546_v6 = vmul.f32 %v544_v4, %v361_v24 }
 0x22c   :  { %v551_v11 = vadd.f32 %v550_v7, %v546_v6 }
 0x22e   :  { %2279 = vtanh.f32 %v551_v11 }
 0x238   :  { %v2280_v12 = vpop.eup %2279 }
 0x239   :  { %v555_v13 = vmul.f32 %v2280_v12, %v553_v55 }
 0x23b   :  { %623 = vmatmul.mubr.f32.vlgmr.msra.gmra.mrb[4].mxu0 %v555_v13  ;;  %694 = vmatmul.mubr.f32.vlgmr.msra.gmra.mrb[4].mxu1 %v555_v13 }
 0x23c   :  { %1946 = vmatpush1.bf16.msra.mxu0 %v2481_v10  ;;  %1978 = vmatpush1.bf16.msra.mxu1 %v2484_v14 }
 0x23d   :  { %1948 = vmatprep.subr.bf16.mxu0 %v2488_v18  ;;  %1980 = vmatprep.subr.bf16.mxu1 %v2490_v19 }
 0x23e   :  { %812 = vmatprep.mubr.f32.mxu0 %v2402_v0  ;;  %883 = vmatprep.mubr.f32.mxu1 %v2402_v0 }
 0x240   :  { %1950 = vmatpush1.bf16.msra.mxu0 %v2493_v23  ;;  %1982 = vmatpush1.bf16.msra.mxu1 %v2497_v27 }
 0x241   :  { %1952 = vmatprep.subr.bf16.mxu0 %v2499_v28  ;;  %1984 = vmatprep.subr.bf16.mxu1 %v2501_v32 }
 0x244   :  { %1954 = vmatpush1.bf16.msra.mxu0 %v2504_v36  ;;  %1986 = vmatpush1.bf16.msra.mxu1 %v2508_v40 }
 0x245   :  { %1956 = vmatprep.subr.bf16.mxu0 %v2510_v41  ;;  %1988 = vmatprep.subr.bf16.mxu1 %v2513_v45 }
 0x248   :  { %1958 = vmatpush1.bf16.msra.mxu0 %v2516_v52  ;;  %1990 = vmatpush1.bf16.msra.mxu1 %v2520_v53 }
 0x249   :  { %1960 = vmatprep.subr.bf16.mxu0 %v2522_v54  ;;  %1992 = vmatprep.subr.bf16.mxu1 %v2525_v58 }
 0x24c   :  { %1962 = vmatpush1.bf16.msra.mxu0 %v2528_v1  ;;  %1994 = vmatpush1.bf16.msra.mxu1 %v2532_v2 }
 0x24d   :  { %1964 = vmatprep.subr.bf16.mxu0 %v2534_v3  ;;  %1996 = vmatprep.subr.bf16.mxu1 %v2537_v8 }
 0x250   :  { %1966 = vmatpush1.bf16.msra.mxu0 %v2540_v17  ;;  %1998 = vmatpush1.bf16.msra.mxu1 %v2544_v21 }
 0x251   :  { %1968 = vmatprep.subr.bf16.mxu0 %v2546_v22  ;;  %2000 = vmatprep.subr.bf16.mxu1 %v2552_v29 }
 0x254   :  { %1970 = vmatpush1.bf16.msra.mxu0 %v2555_v37  ;;  %2002 = vmatpush1.bf16.msra.mxu1 %v2559_v38 }
 0x255   :  { %1972 = vmatprep.subr.bf16.mxu0 %v2561_v39  ;;  %2004 = vmatprep.subr.bf16.mxu1 %v2564_v44 }
 0x258   :  { %1974 = vmatpush1.bf16.msra.mxu0 %v2567_v48  ;;  %2006 = vmatpush1.bf16.msra.mxu1 %v2571_v49 }
 0x259   :  { %2008 = vmatprep.subr.bf16.mxu0 %v2477_v5  ;;  %2040 = vmatprep.subr.bf16.mxu1 %v2479_v9 }
 0x30e   :  { %v624_v15 = vpop.f32.mrb[4].mxu0  ;;  %v695_v16 = vpop.f32.mrb[4].mxu1 }
 0x30f   :  { %v626_v20 = vpop.f32.mrb[5].mxu0  ;;  %v697_v24 = vpop.f32.mrb[5].mxu1 }
 0x310   :  { %v704_v25 = vcombine.low %v624_v15, %v626_v20  ;;  %v705_v26 = vcombine.low %v695_v16, %v697_v24  ;;  %v747_v24 = vld [vmem:[#allocation2 + $0x3] ss:$8 sm:$0xf] }
 0x312   :  { %v712_v30 = vrot.slane %v704_v25, %v2621_v46  ;;  %v719_v31 = vrot.slane %v705_v26, %v2621_v46 }
 0x314   :  { %v720_v33 = vcombine.low %v712_v30, %v719_v31 }
 0x316   :  { %v727_v34 = vrot.slane %v720_v33, %v2621_v46 }
 0x318   :  { %v729_v42 = vadd.f32 %v727_v34, %v557_v35 }
 0x31a   :  { %2281 = vtanh.f32 %v729_v42 }
 0x324   :  { %v2282_v43 = vpop.eup %2281 }
 0x325   :  { %v731_v47 = vmul.f32 0.5, %v2282_v43  ;;  %v738_v51 = vrot.slane %v2282_v43, 3 }
 0x327   :  { %v732_v50 = vadd.f32 0.5, %v731_v47 }
 0x329   :  { %v734_v56 = vrot.slane %v732_v50, 1  ;;  %v740_v59 = vmul.f32 %v738_v51, %v732_v50  ;;  %v743_v61 = vrot.slane %v732_v50, 2 }
 0x32b   :  { %v736_v57 = vmul.f32 %v734_v56, %v551_v11 }
 0x32d   :  { %v741_v60 = vadd.f32 %v740_v59, %v736_v57 }
 0x32f   :  { %2283 = vtanh.f32 %v741_v60 }
 0x339   :  { %v2284_v62 = vpop.eup %2283 }
 0x33a   :  { %v745_v63 = vmul.f32 %v2284_v62, %v743_v61 }
 0x33c   :  { %813 = vmatmul.mubr.f32.vlgmr.msra.gmra.mrb[6].mxu0 %v745_v63  ;;  %884 = vmatmul.mubr.f32.vlgmr.msra.gmra.mrb[6].mxu1 %v745_v63 }
 0x33d   :  { %2010 = vmatpush1.bf16.msra.mxu0 %v2481_v10  ;;  %2042 = vmatpush1.bf16.msra.mxu1 %v2484_v14 }
 0x33e   :  { %2012 = vmatprep.subr.bf16.mxu0 %v2488_v18  ;;  %2044 = vmatprep.subr.bf16.mxu1 %v2490_v19 }
 0x33f   :  { %1002 = vmatprep.mubr.f32.mxu0 %v2402_v0  ;;  %1073 = vmatprep.mubr.f32.mxu1 %v2402_v0 }
 0x341   :  { %2014 = vmatpush1.bf16.msra.mxu0 %v2493_v23  ;;  %2046 = vmatpush1.bf16.msra.mxu1 %v2497_v27 }
 0x342   :  { %2016 = vmatprep.subr.bf16.mxu0 %v2499_v28  ;;  %2048 = vmatprep.subr.bf16.mxu1 %v2501_v32 }
 0x345   :  { %2018 = vmatpush1.bf16.msra.mxu0 %v2504_v36  ;;  %2050 = vmatpush1.bf16.msra.mxu1 %v2508_v40 }
 0x346   :  { %2020 = vmatprep.subr.bf16.mxu0 %v2510_v41  ;;  %2052 = vmatprep.subr.bf16.mxu1 %v2513_v45 }
 0x349   :  { %2022 = vmatpush1.bf16.msra.mxu0 %v2516_v52  ;;  %2054 = vmatpush1.bf16.msra.mxu1 %v2520_v53 }
 0x34a   :  { %2024 = vmatprep.subr.bf16.mxu0 %v2522_v54  ;;  %2056 = vmatprep.subr.bf16.mxu1 %v2525_v58 }
 0x34d   :  { %2026 = vmatpush1.bf16.msra.mxu0 %v2528_v1  ;;  %2058 = vmatpush1.bf16.msra.mxu1 %v2532_v2 }
 0x34e   :  { %2028 = vmatprep.subr.bf16.mxu0 %v2534_v3  ;;  %2060 = vmatprep.subr.bf16.mxu1 %v2537_v8 }
 0x351   :  { %2030 = vmatpush1.bf16.msra.mxu0 %v2540_v17  ;;  %2062 = vmatpush1.bf16.msra.mxu1 %v2544_v21 }
 0x352   :  { %2032 = vmatprep.subr.bf16.mxu0 %v2546_v22  ;;  %2064 = vmatprep.subr.bf16.mxu1 %v2552_v29 }
 0x355   :  { %2034 = vmatpush1.bf16.msra.mxu0 %v2555_v37  ;;  %2066 = vmatpush1.bf16.msra.mxu1 %v2559_v38 }
 0x356   :  { %2036 = vmatprep.subr.bf16.mxu0 %v2561_v39  ;;  %2068 = vmatprep.subr.bf16.mxu1 %v2564_v44 }
 0x359   :  { %2038 = vmatpush1.bf16.msra.mxu0 %v2567_v48  ;;  %2070 = vmatpush1.bf16.msra.mxu1 %v2571_v49 }
 0x35a   :  { %2072 = vmatprep.subr.bf16.mxu0 %v2477_v5  ;;  %2104 = vmatprep.subr.bf16.mxu1 %v2479_v9 }
 0x40f   :  { %v814_v4 = vpop.f32.mrb[6].mxu0  ;;  %v885_v6 = vpop.f32.mrb[6].mxu1 }
 0x410   :  { %v816_v7 = vpop.f32.mrb[7].mxu0  ;;  %v887_v11 = vpop.f32.mrb[7].mxu1 }
 0x411   :  { %v894_v55 = vcombine.low %v814_v4, %v816_v7  ;;  %v895_v12 = vcombine.low %v885_v6, %v887_v11  ;;  %v937_v11 = vld [vmem:[#allocation2 + $0x4] ss:$8 sm:$0xf] }
 0x413   :  { %v902_v13 = vrot.slane %v894_v55, %v2621_v46  ;;  %v909_v15 = vrot.slane %v895_v12, %v2621_v46 }
 0x415   :  { %v910_v16 = vcombine.low %v902_v13, %v909_v15 }
 0x417   :  { %v917_v20 = vrot.slane %v910_v16, %v2621_v46 }
 0x419   :  { %v919_v25 = vadd.f32 %v917_v20, %v747_v24 }
 0x41b   :  { %2285 = vtanh.f32 %v919_v25 }
 0x425   :  { %v2286_v26 = vpop.eup %2285 }
 0x426   :  { %v921_v30 = vmul.f32 0.5, %v2286_v26  ;;  %v928_v33 = vrot.slane %v2286_v26, 3 }
 0x428   :  { %v922_v31 = vadd.f32 0.5, %v921_v30 }
 0x42a   :  { %v924_v34 = vrot.slane %v922_v31, 1  ;;  %v930_v42 = vmul.f32 %v928_v33, %v922_v31  ;;  %v933_v47 = vrot.slane %v922_v31, 2 }
 0x42c   :  { %v926_v35 = vmul.f32 %v924_v34, %v741_v60 }
 0x42e   :  { %v931_v43 = vadd.f32 %v930_v42, %v926_v35 }
 0x430   :  { %2287 = vtanh.f32 %v931_v43 }
 0x43a   :  { %v2288_v50 = vpop.eup %2287 }
 0x43b   :  { %v935_v51 = vmul.f32 %v2288_v50, %v933_v47 }
 0x43d   :  { %1003 = vmatmul.mubr.f32.vlgmr.msra.gmra.mrb[8].mxu0 %v935_v51  ;;  %1074 = vmatmul.mubr.f32.vlgmr.msra.gmra.mrb[8].mxu1 %v935_v51 }
 0x43e   :  { %2074 = vmatpush1.bf16.msra.mxu0 %v2481_v10  ;;  %2106 = vmatpush1.bf16.msra.mxu1 %v2484_v14 }
 0x43f   :  { %2076 = vmatprep.subr.bf16.mxu0 %v2488_v18  ;;  %2108 = vmatprep.subr.bf16.mxu1 %v2490_v19 }
 0x440   :  { %1192 = vmatprep.mubr.f32.mxu0 %v2402_v0  ;;  %1263 = vmatprep.mubr.f32.mxu1 %v2402_v0 }
 0x442   :  { %2078 = vmatpush1.bf16.msra.mxu0 %v2493_v23  ;;  %2110 = vmatpush1.bf16.msra.mxu1 %v2497_v27 }
 0x443   :  { %2080 = vmatprep.subr.bf16.mxu0 %v2499_v28  ;;  %2112 = vmatprep.subr.bf16.mxu1 %v2501_v32 }
 0x446   :  { %2082 = vmatpush1.bf16.msra.mxu0 %v2504_v36  ;;  %2114 = vmatpush1.bf16.msra.mxu1 %v2508_v40 }
 0x447   :  { %2084 = vmatprep.subr.bf16.mxu0 %v2510_v41  ;;  %2116 = vmatprep.subr.bf16.mxu1 %v2513_v45 }
 0x44a   :  { %2086 = vmatpush1.bf16.msra.mxu0 %v2516_v52  ;;  %2118 = vmatpush1.bf16.msra.mxu1 %v2520_v53 }
 0x44b   :  { %2088 = vmatprep.subr.bf16.mxu0 %v2522_v54  ;;  %2120 = vmatprep.subr.bf16.mxu1 %v2525_v58 }
 0x44e   :  { %2090 = vmatpush1.bf16.msra.mxu0 %v2528_v1  ;;  %2122 = vmatpush1.bf16.msra.mxu1 %v2532_v2 }
 0x44f   :  { %2092 = vmatprep.subr.bf16.mxu0 %v2534_v3  ;;  %2124 = vmatprep.subr.bf16.mxu1 %v2537_v8 }
 0x452   :  { %2094 = vmatpush1.bf16.msra.mxu0 %v2540_v17  ;;  %2126 = vmatpush1.bf16.msra.mxu1 %v2544_v21 }
 0x453   :  { %2096 = vmatprep.subr.bf16.mxu0 %v2546_v22  ;;  %2128 = vmatprep.subr.bf16.mxu1 %v2552_v29 }
 0x456   :  { %2098 = vmatpush1.bf16.msra.mxu0 %v2555_v37  ;;  %2130 = vmatpush1.bf16.msra.mxu1 %v2559_v38 }
 0x457   :  { %2100 = vmatprep.subr.bf16.mxu0 %v2561_v39  ;;  %2132 = vmatprep.subr.bf16.mxu1 %v2564_v44 }
 0x45a   :  { %2102 = vmatpush1.bf16.msra.mxu0 %v2567_v48  ;;  %2134 = vmatpush1.bf16.msra.mxu1 %v2571_v49 }
 0x45b   :  { %2136 = vmatprep.subr.bf16.mxu0 %v2477_v5  ;;  %2168 = vmatprep.subr.bf16.mxu1 %v2479_v9 }
 0x510   :  { %v1004_v56 = vpop.f32.mrb[8].mxu0  ;;  %v1075_v57 = vpop.f32.mrb[8].mxu1 }
 0x511   :  { %v1006_v59 = vpop.f32.mrb[9].mxu0  ;;  %v1077_v60 = vpop.f32.mrb[9].mxu1 }
 0x512   :  { %v1084_v61 = vcombine.low %v1004_v56, %v1006_v59  ;;  %v1085_v62 = vcombine.low %v1075_v57, %v1077_v60  ;;  %v1127_v60 = vld [vmem:[#allocation2 + $0x5] ss:$8 sm:$0xf] }
 0x514   :  { %v1092_v63 = vrot.slane %v1084_v61, %v2621_v46  ;;  %v1099_v4 = vrot.slane %v1085_v62, %v2621_v46 }
 0x516   :  { %v1100_v6 = vcombine.low %v1092_v63, %v1099_v4 }
 0x518   :  { %v1107_v7 = vrot.slane %v1100_v6, %v2621_v46 }
 0x51a   :  { %v1109_v55 = vadd.f32 %v1107_v7, %v937_v11 }
 0x51c   :  { %2289 = vtanh.f32 %v1109_v55 }
 0x526   :  { %v2290_v12 = vpop.eup %2289 }
 0x527   :  { %v1111_v13 = vmul.f32 0.5, %v2290_v12  ;;  %v1118_v16 = vrot.slane %v2290_v12, 3 }
 0x529   :  { %v1112_v15 = vadd.f32 0.5, %v1111_v13 }
 0x52b   :  { %v1114_v20 = vrot.slane %v1112_v15, 1  ;;  %v1120_v25 = vmul.f32 %v1118_v16, %v1112_v15  ;;  %v1123_v30 = vrot.slane %v1112_v15, 2 }
 0x52d   :  { %v1116_v24 = vmul.f32 %v1114_v20, %v931_v43  ;;  %v1507_v20 = vld [vmem:[#allocation2 + $0x7] ss:$8 sm:$0xf] }
 0x52f   :  { %v1121_v26 = vadd.f32 %v1120_v25, %v1116_v24 }
 0x531   :  { %2291 = vtanh.f32 %v1121_v26 }
 0x53b   :  { %v2292_v31 = vpop.eup %2291 }
 0x53c   :  { %v1125_v33 = vmul.f32 %v2292_v31, %v1123_v30 }
 0x53e   :  { %1193 = vmatmul.mubr.f32.vlgmr.msra.gmra.mrb[10].mxu0 %v1125_v33  ;;  %1264 = vmatmul.mubr.f32.vlgmr.msra.gmra.mrb[10].mxu1 %v1125_v33 }
 0x53f   :  { %2138 = vmatpush1.bf16.msra.mxu0 %v2481_v10  ;;  %2170 = vmatpush1.bf16.msra.mxu1 %v2484_v14 }
 0x540   :  { %2140 = vmatprep.subr.bf16.mxu0 %v2488_v18  ;;  %2172 = vmatprep.subr.bf16.mxu1 %v2490_v19 }
 0x541   :  { %1382 = vmatprep.mubr.f32.mxu0 %v2402_v0  ;;  %1453 = vmatprep.mubr.f32.mxu1 %v2402_v0 }
 0x543   :  { %2142 = vmatpush1.bf16.msra.mxu0 %v2493_v23  ;;  %2174 = vmatpush1.bf16.msra.mxu1 %v2497_v27 }
 0x544   :  { %2144 = vmatprep.subr.bf16.mxu0 %v2499_v28  ;;  %2176 = vmatprep.subr.bf16.mxu1 %v2501_v32 }
 0x547   :  { %2146 = vmatpush1.bf16.msra.mxu0 %v2504_v36  ;;  %2178 = vmatpush1.bf16.msra.mxu1 %v2508_v40 }
 0x548   :  { %2148 = vmatprep.subr.bf16.mxu0 %v2510_v41  ;;  %2180 = vmatprep.subr.bf16.mxu1 %v2513_v45 }
 0x54b   :  { %2150 = vmatpush1.bf16.msra.mxu0 %v2516_v52  ;;  %2182 = vmatpush1.bf16.msra.mxu1 %v2520_v53 }
 0x54c   :  { %2152 = vmatprep.subr.bf16.mxu0 %v2522_v54  ;;  %2184 = vmatprep.subr.bf16.mxu1 %v2525_v58 }
 0x54f   :  { %2154 = vmatpush1.bf16.msra.mxu0 %v2528_v1  ;;  %2186 = vmatpush1.bf16.msra.mxu1 %v2532_v2 }
 0x550   :  { %2156 = vmatprep.subr.bf16.mxu0 %v2534_v3  ;;  %2188 = vmatprep.subr.bf16.mxu1 %v2537_v8 }
 0x553   :  { %2158 = vmatpush1.bf16.msra.mxu0 %v2540_v17  ;;  %2190 = vmatpush1.bf16.msra.mxu1 %v2544_v21 }
 0x554   :  { %2160 = vmatprep.subr.bf16.mxu0 %v2546_v22  ;;  %2192 = vmatprep.subr.bf16.mxu1 %v2552_v29 }
 0x557   :  { %2162 = vmatpush1.bf16.msra.mxu0 %v2555_v37  ;;  %2194 = vmatpush1.bf16.msra.mxu1 %v2559_v38 }
 0x558   :  { %2164 = vmatprep.subr.bf16.mxu0 %v2561_v39  ;;  %2196 = vmatprep.subr.bf16.mxu1 %v2564_v44 }
 0x55b   :  { %2166 = vmatpush1.bf16.msra.mxu0 %v2567_v48  ;;  %2198 = vmatpush1.bf16.msra.mxu1 %v2571_v49 }
 0x55c   :  { %2200 = vmatprep.subr.bf16.mxu0 %v2477_v5  ;;  %2232 = vmatprep.subr.bf16.mxu1 %v2479_v9 }
 0x611   :  { %v1194_v34 = vpop.f32.mrb[10].mxu0  ;;  %v1265_v35 = vpop.f32.mrb[10].mxu1 }
 0x612   :  { %v1196_v42 = vpop.f32.mrb[11].mxu0  ;;  %v1267_v43 = vpop.f32.mrb[11].mxu1 }
 0x613   :  { %v1274_v47 = vcombine.low %v1194_v34, %v1196_v42  ;;  %v1275_v50 = vcombine.low %v1265_v35, %v1267_v43 }
 0x615   :  { %v1282_v51 = vrot.slane %v1274_v47, %v2621_v46  ;;  %v1289_v56 = vrot.slane %v1275_v50, %v2621_v46  ;;  %v1698_v50 = vld [vmem:[%s2898_s4] sm:$0x1] }
 0x617   :  { %v1290_v57 = vcombine.low %v1282_v51, %v1289_v56 }
 0x619   :  { %v1297_v59 = vrot.slane %v1290_v57, %v2621_v46 }
 0x61b   :  { %v1299_v61 = vadd.f32 %v1297_v59, %v1127_v60 }
 0x61d   :  { %2293 = vtanh.f32 %v1299_v61 }
 0x627   :  { %v2294_v62 = vpop.eup %2293 }
 0x628   :  { %v1301_v5 = vmul.f32 0.5, %v2294_v62  ;;  %v1308_v9 = vrot.slane %v2294_v62, 3 }
 0x62a   :  { %v1302_v63 = vadd.f32 0.5, %v1301_v5 }
 0x62c   :  { %v1304_v4 = vrot.slane %v1302_v63, 1  ;;  %v1310_v7 = vmul.f32 %v1308_v9, %v1302_v63  ;;  %v1313_v55 = vrot.slane %v1302_v63, 2 }
 0x62e   :  { %v1306_v6 = vmul.f32 %v1304_v4, %v1121_v26 }
 0x630   :  { %v1311_v11 = vadd.f32 %v1310_v7, %v1306_v6 }
 0x632   :  { %2295 = vtanh.f32 %v1311_v11 }
 0x63c   :  { %v2296_v12 = vpop.eup %2295 }
 0x63d   :  { %v1315_v13 = vmul.f32 %v2296_v12, %v1313_v55 }
 0x63f   :  { %1383 = vmatmul.mubr.f32.vlgmr.msra.gmra.mrb[12].mxu0 %v1315_v13  ;;  %1454 = vmatmul.mubr.f32.vlgmr.msra.gmra.mrb[12].mxu1 %v1315_v13 }
 0x640   :  { %2202 = vmatpush1.bf16.msra.mxu0 %v2481_v10  ;;  %2234 = vmatpush1.bf16.msra.mxu1 %v2484_v14 }
 0x641   :  { %2204 = vmatprep.subr.bf16.mxu0 %v2488_v18  ;;  %2236 = vmatprep.subr.bf16.mxu1 %v2490_v19 }
 0x642   :  { %1572 = vmatprep.mubr.f32.mxu0 %v2402_v0  ;;  %1643 = vmatprep.mubr.f32.mxu1 %v2402_v0 }
 0x644   :  { %2206 = vmatpush1.bf16.msra.mxu0 %v2493_v23  ;;  %2238 = vmatpush1.bf16.msra.mxu1 %v2497_v27 }
 0x645   :  { %2208 = vmatprep.subr.bf16.mxu0 %v2499_v28  ;;  %2240 = vmatprep.subr.bf16.mxu1 %v2501_v32 }
 0x648   :  { %2210 = vmatpush1.bf16.msra.mxu0 %v2504_v36  ;;  %2242 = vmatpush1.bf16.msra.mxu1 %v2508_v40  ;;  %v1317_v40 = vld [vmem:[#allocation2 + $0x6] ss:$8 sm:$0xf] }
 0x649   :  { %2212 = vmatprep.subr.bf16.mxu0 %v2510_v41  ;;  %2244 = vmatprep.subr.bf16.mxu1 %v2513_v45 }
 0x64c   :  { %2214 = vmatpush1.bf16.msra.mxu0 %v2516_v52  ;;  %2246 = vmatpush1.bf16.msra.mxu1 %v2520_v53 }
 0x64d   :  { %2216 = vmatprep.subr.bf16.mxu0 %v2522_v54  ;;  %2248 = vmatprep.subr.bf16.mxu1 %v2525_v58 }
 0x650   :  { %2218 = vmatpush1.bf16.msra.mxu0 %v2528_v1  ;;  %2250 = vmatpush1.bf16.msra.mxu1 %v2532_v2 }
 0x651   :  { %2220 = vmatprep.subr.bf16.mxu0 %v2534_v3  ;;  %2252 = vmatprep.subr.bf16.mxu1 %v2537_v8 }
 0x654   :  { %2222 = vmatpush1.bf16.msra.mxu0 %v2540_v17  ;;  %2254 = vmatpush1.bf16.msra.mxu1 %v2544_v21 }
 0x655   :  { %2224 = vmatprep.subr.bf16.mxu0 %v2546_v22  ;;  %2256 = vmatprep.subr.bf16.mxu1 %v2552_v29 }
 0x658   :  { %2226 = vmatpush1.bf16.msra.mxu0 %v2555_v37  ;;  %2258 = vmatpush1.bf16.msra.mxu1 %v2559_v38 }
 0x659   :  { %2228 = vmatprep.subr.bf16.mxu0 %v2561_v39  ;;  %2260 = vmatprep.subr.bf16.mxu1 %v2564_v44 }
 0x65c   :  { %2230 = vmatpush1.bf16.msra.mxu0 %v2567_v48  ;;  %2262 = vmatpush1.bf16.msra.mxu1 %v2571_v49 }
 0x712   :  { %v1384_v0 = vpop.f32.mrb[12].mxu0  ;;  %v1455_v10 = vpop.f32.mrb[12].mxu1 }
 0x713   :  { %v1386_v14 = vpop.f32.mrb[13].mxu0  ;;  %v1457_v18 = vpop.f32.mrb[13].mxu1 }
 0x714   :  { %v1464_v19 = vcombine.low %v1384_v0, %v1386_v14  ;;  %v1465_v23 = vcombine.low %v1455_v10, %v1457_v18 }
 0x716   :  { %v1472_v27 = vrot.slane %v1464_v19, %v2621_v46  ;;  %v1479_v28 = vrot.slane %v1465_v23, %v2621_v46 }
 0x718   :  { %v1480_v32 = vcombine.low %v1472_v27, %v1479_v28 }
 0x71a   :  { %v1487_v36 = vrot.slane %v1480_v32, %v2621_v46 }
 0x71c   :  { %v1489_v41 = vadd.f32 %v1487_v36, %v1317_v40 }
 0x71e   :  { %2297 = vtanh.f32 %v1489_v41 }
 0x728   :  { %v2298_v45 = vpop.eup %2297 }
 0x729   :  { %v1491_v52 = vmul.f32 0.5, %v2298_v45  ;;  %v1498_v54 = vrot.slane %v2298_v45, 3 }
 0x72b   :  { %v1492_v53 = vadd.f32 0.5, %v1491_v52 }
 0x72d   :  { %v1494_v58 = vrot.slane %v1492_v53, 1  ;;  %v1500_v2 = vmul.f32 %v1498_v54, %v1492_v53  ;;  %v1503_v8 = vrot.slane %v1492_v53, 2 }
 0x72f   :  { %v1496_v1 = vmul.f32 %v1494_v58, %v1311_v11 }
 0x731   :  { %v1501_v3 = vadd.f32 %v1500_v2, %v1496_v1 }
 0x733   :  { %2299 = vtanh.f32 %v1501_v3 }
 0x73d   :  { %v2300_v17 = vpop.eup %2299 }
 0x73e   :  { %v1505_v21 = vmul.f32 %v2300_v17, %v1503_v8 }
 0x740   :  { %1573 = vmatmul.mubr.f32.vlgmr.msra.gmra.mrb[14].mxu0 %v1505_v21  ;;  %1644 = vmatmul.mubr.f32.vlgmr.msra.gmra.mrb[14].mxu1 %v1505_v21 }
 0x813   :  { %v1574_v22 = vpop.f32.mrb[14].mxu0  ;;  %v1645_v29 = vpop.f32.mrb[14].mxu1 }
 0x814   :  { %v1576_v37 = vpop.f32.mrb[15].mxu0  ;;  %v1647_v38 = vpop.f32.mrb[15].mxu1 }
 0x815   :  { %v1654_v39 = vcombine.low %v1574_v22, %v1576_v37  ;;  %v1655_v44 = vcombine.low %v1645_v29, %v1647_v38 }
 0x817   :  { %v1662_v48 = vrot.slane %v1654_v39, %v2621_v46  ;;  %v1669_v49 = vrot.slane %v1655_v44, %v2621_v46 }
 0x819   :  { %v1670_v15 = vcombine.low %v1662_v48, %v1669_v49 }
 0x81b   :  { %v1677_v16 = vrot.slane %v1670_v15, %v2621_v46 }
 0x81d   :  { %v1679_v24 = vadd.f32 %v1677_v16, %v1507_v20 }
 0x81f   :  { %2301 = vtanh.f32 %v1679_v24 }
 0x829   :  { %v2302_v25 = vpop.eup %2301 }
 0x82a   :  { %v1681_v26 = vmul.f32 0.5, %v2302_v25  ;;  %v1688_v33 = vrot.slane %v2302_v25, 3 }
 0x82c   :  { %v1682_v30 = vadd.f32 0.5, %v1681_v26 }
 0x82e   :  { %v1684_v31 = vrot.slane %v1682_v30, 1  ;;  %v1690_v35 = vmul.f32 %v1688_v33, %v1682_v30  ;;  %v1693_v43 = vrot.slane %v1682_v30, 2 }
 0x830   :  { %v1686_v34 = vmul.f32 %v1684_v31, %v1501_v3 }
 0x832   :  { %v1691_v42 = vadd.f32 %v1690_v35, %v1686_v34 }
 0x834   :  { %2303 = vtanh.f32 %v1691_v42  ;;  %1697 = vst [vmem:[#allocation10] sm:$0x1] %v1691_v42 }
 0x83e   :  { %v2304_v47 = vpop.eup %2303 }
 0x83f   :  { %v1695_v46 = vmul.f32 %v2304_v47, %v1693_v43 }
 0x841   :  { %v1699_v51 = vmul.f32 %v1698_v50, %v1695_v46  ;;  %1696 = vst [vmem:[#allocation8] sm:$0x1] %v1695_v46 }
 0x843   :  { %v1701_v56 = vsel %vm1700_vm0, %v1699_v51, 0.0 }
 0x844   :  { %1702 = vadd.xlane.f32.xlu0 %v1701_v56 }
 0x845   :  { %2338 = shalt.err (!%p2335_p12)
}
 0x846   :  { %s2339_s4 = scalar_lea.hbm %s2903_s9, 16 }
 0x847   :  { %p2340_p13 = scmp.ne.s32.totalorder %s2903_s9, %s2339_s4  ;;  %p2343_p0 = scmp.lt.u32.totalorder %s2339_s4, %s2903_s9 }
 0x849   :  { %p2345_p1 = pnand %p2343_p0, %p2340_p13 }
 0x84b   :  { %2348 = shalt.err (!%p2345_p1)
}
 0x84c   :  { %1728 = dma.vmem_to_hbm [thread:$0]  %s1726_s14, 16, %s2903_s9, [#allocation9]  }
 0x84d   :  { %s2406_s25 = smov [#allocation10]  }
 0x84e   :  { %s1735_s26 = sshll.u32 %s2406_s25, 4  ;;  %s1736_s26 = int_to_ptr.vmem [resolvable:$true] %s1735_s26 }
 0x84f   :  { %s2349_s2 = scalar_lea.vmem %s1736_s26, 16  ;;  %s2353_s27 = scalar_lea.vmem %s1736_s26, 32 }
 0x850   :  { %p2350_p2 = scmp.ne.s32.totalorder %s1736_s26, %s2349_s2  ;;  %p2354_p3 = scmp.lt.s32.totalorder %s1736_s26, %s1736_s26 }
 0x851   :  { %p2355_p4 = scmp.lt.s32.totalorder %s2353_s27, %s2349_s2 }
 0x853   :  { %p2356_p5 = por %p2355_p4, %p2354_p3 }
 0x855   :  { %p2357_p6 = pnand %p2356_p5, %p2350_p2 }
 0x857   :  { %2360 = shalt.err (!%p2357_p6)
}
 0x858   :  { %s2361_s6 = scalar_lea.hbm %s2904_s10, 16 }
 0x859   :  { %p2362_p7 = scmp.ne.s32.totalorder %s2904_s10, %s2361_s6  ;;  %p2365_p8 = scmp.lt.u32.totalorder %s2361_s6, %s2904_s10 }
 0x85b   :  { %p2367_p9 = pnand %p2365_p8, %p2362_p7 }
 0x85d   :  { %2370 = shalt.err (!%p2367_p9)
}
 0x85e   :  { %1738 = dma.vmem_to_hbm [thread:$0]  %s1736_s26, 16, %s2904_s10, [#allocation9]   ;;  %v1705_v57 = vstv %s2899_s5  ;;  %vm1707_vm1 = vcmask 0  }
 0x85f   :  { %s2407_s13 = smov [#allocation7]  }
 0x860   :  { %s1715_s14 = sshll.u32 %s2407_s13, 4  ;;  %s1716_s14 = int_to_ptr.vmem [resolvable:$true] %s1715_s14 }
 0x861   :  { %s2371_s15 = scalar_lea.vmem %s1716_s14, 16  ;;  %s2375_s16 = scalar_lea.vmem %s1716_s14, 32 }
 0x862   :  { %p2372_p10 = scmp.ne.s32.totalorder %s1716_s14, %s2371_s15  ;;  %p2376_p11 = scmp.lt.s32.totalorder %s1716_s14, %s1716_s14 }
 0x863   :  { %p2377_p12 = scmp.lt.s32.totalorder %s2375_s16, %s2371_s15 }
 0x865   :  { %p2378_p13 = por %p2377_p12, %p2376_p11 }
 0x867   :  { %p2379_p0 = pnand %p2378_p13, %p2372_p10 }
 0x8d1   :  { %v1703_v59 = vpop.xlane.xlu0 %1702 }
 0x8d2   :  { %v1706_v60 = vadd.f32 %v1705_v57, %v1703_v59 }
 0x8d4   :  { %1708 = vst.msk [vmem:[#allocation7] sm:$0x1] %vm1707_vm1, %v1706_v60 }
 0x8d5   :  { %2382 = shalt.err (!%p2379_p0)
}
 0x8d6   :  { %s2383_s18 = scalar_lea.hbm %s2902_s8, 16 }
 0x8d7   :  { %p2384_p1 = scmp.ne.s32.totalorder %s2902_s8, %s2383_s18  ;;  %p2387_p2 = scmp.lt.u32.totalorder %s2383_s18, %s2902_s8 }
 0x8d9   :  { %p2389_p3 = pnand %p2387_p2, %p2384_p1 }
 0x8db   :  { %2392 = shalt.err (!%p2389_p3)
}
 0x8dc   :  { %1718 = dma.vmem_to_hbm [thread:$0]  %s1716_s14, 16, %s2902_s8, [#allocation6]  }
 0x8dd   :  { %2395 = dma.done.wait [#allocation6], 16  }
 0x8de   :  { %2396 = vsyncadd [#allocation6], 4294967280 }
 0x8df   :  { %2397 = dma.done.wait [#allocation9], 32  }
 0x8e0   :  { %2398 = vsyncadd [#allocation9], 4294967264 }
 0x8e1   :  { %1748 = vsyncpa [#allocation5], 1 }
 0x8e2   :  { %1749 = vsyncpa [#allocation6], 1 }
 0x8e3   :  { %1750 = vsyncpa [#allocation9], 1 }

</bundles_post_ra>
